<compile_context>
chip_gen: v7x
topology: tpu7x:2x2x1
jax: 0.10.0
libtpu: 0.0.40
codegen_flags: <defaults>
</compile_context>

<pallas_src>
import numpy as np
import jax
import jax.numpy as jnp
from jax.experimental import pallas as pl
from jax.experimental.pallas import tpu as pltpu

H1 = 400
H2 = 300
ACTION_DIM = 3
STATE_DIM = 11
INIT_W = 0.003


def _round_up(x, m):
    return ((x + m - 1) // m) * m


H1P = _round_up(H1, 128)   # 512
H2P = _round_up(H2, 128)   # 384


def critic_kernel(s_ref, a_ref, w1_ref, w2a_ref, w2b_ref, w3_ref, b3_ref,
                  out_ref):
    # Layer 1: (H1P, S+1) @ (S+1, tb) -> relu.  b1 is folded into the last
    # weight column (the input carries a ones row), so this is one MXU matmul.
    x1 = jnp.maximum(
        jnp.dot(w1_ref[...], s_ref[...], preferred_element_type=jnp.float32),
        0.0)

    # Layer 2 on cat([x, action], 1): split-weight form (no concat); b2 is
    # folded into the action-side weight via the ones row.
    x2 = jnp.maximum(
        jnp.dot(w2a_ref[...], x1, preferred_element_type=jnp.float32)
        + jnp.dot(w2b_ref[...], a_ref[...], preferred_element_type=jnp.float32),
        0.0)

    # Layer 3: (1, H2P) @ (H2P, tb) -> lane-dense (1, tb) output row.
    # b3 is a scalar read from SMEM (no VMEM DMA for a single float).
    out_ref[...] = (
        jnp.dot(w3_ref[...], x2, preferred_element_type=jnp.float32)
        + b3_ref[0, 0])


def init_params(key, state_dim=STATE_DIM, action_dim=ACTION_DIM,
                h1=H1, h2=H2, init_w=INIT_W):
    """Raw params mirroring the PyTorch module's init, stored as (in, out).

    fanin_() in the reference uses size[0] of the (out, in) torch weight,
    i.e. bound = 1/sqrt(out_features) (bug-compatible); biases follow the
    nn.Linear default (uniform +/- 1/sqrt(in_features)); linear3 weight uses
    +/- init_w.
    """
    ks = jax.random.split(key, 6)
    u = lambda k, shape, b: jax.random.uniform(k, shape, jnp.float32, -b, b)

    w1 = u(ks[0], (state_dim, h1), 1.0 / np.sqrt(h1))
    b1 = u(ks[1], (1, h1), 1.0 / np.sqrt(state_dim))
    w2 = u(ks[2], (h1 + action_dim, h2), 1.0 / np.sqrt(h2))
    b2 = u(ks[3], (1, h2), 1.0 / np.sqrt(h1 + action_dim))
    w3 = u(ks[4], (h2, 1), init_w)
    b3 = u(ks[5], (1, 1), 1.0 / np.sqrt(h2))
    return dict(w1=w1, b1=b1, w2=w2, b2=b2, w3=w3, b3=b3)


def pack_params(raw):
    """Kernel layout: transposed, zero-padded to lane multiples, biases folded."""
    w1, b1 = raw["w1"], raw["b1"]
    w2, b2 = raw["w2"], raw["b2"]
    w3 = raw["w3"]
    s_dim, h1 = w1.shape
    h2 = w2.shape[1]
    h1p, h2p = _round_up(h1, 128), _round_up(h2, 128)

    # Layer 1: (H1P, S+1) = [W1^T | b1^T] with zero rows beyond h1.
    w1_aug = jnp.concatenate([w1.T, b1.T], axis=1)
    w1_aug = jnp.pad(w1_aug, ((0, h1p - h1), (0, 0)))

    # Layer 2 split for the no-concat path.
    w2a, w2b = w2[:h1], w2[h1:]
    w2a_t = jnp.pad(w2a.T, ((0, h2p - h2), (0, h1p - h1)))
    w2b_aug = jnp.concatenate([w2b.T, b2.T], axis=1)            # (h2, A+1)
    w2b_aug = jnp.pad(w2b_aug, ((0, h2p - h2), (0, 0)))

    w3_row = jnp.pad(w3.T, ((0, 0), (0, h2p - h2)))             # (1, H2P)
    return dict(w1_aug=w1_aug, w2a_t=w2a_t, w2b_aug=w2b_aug,
                w3_row=w3_row, b3=raw["b3"])


def critic_forward(state, action, kparams, tile_b=512):
    assert tile_b % 128 == 0
    B, s_dim = state.shape
    a_dim = action.shape[1]
    h1p = kparams["w1_aug"].shape[0]
    h2p = kparams["w2a_t"].shape[0]

    # Batch tile: multiple of 8 (sublane); if the grid has >1 step the tile is
    # tile_b (a multiple of 128, so output blocks stay lane-aligned).
    tb = min(tile_b, _round_up(B, 8))
    bp = _round_up(B, tb)

    # Transpose + append a ones row (bias folding), then zero-pad the batch.
    ones = jnp.ones((B, 1), jnp.float32)
    s_aug = jnp.concatenate([state, ones], axis=1).T            # (S+1, B)
    a_aug = jnp.concatenate([action, ones], axis=1).T           # (A+1, B)
    if bp != B:
        s_aug = jnp.pad(s_aug, ((0, 0), (0, bp - B)))
        a_aug = jnp.pad(a_aug, ((0, 0), (0, bp - B)))

    batch_spec = lambda rows: pl.BlockSpec((rows, tb), lambda i: (0, i))
    resident = lambda shape: pl.BlockSpec(shape, lambda i: (0, 0))

    out = pl.pallas_call(
        critic_kernel,
        out_shape=jax.ShapeDtypeStruct((1, bp), jnp.float32),
        grid=(bp // tb,),
        in_specs=[
            batch_spec(s_dim + 1),                              # state^T + ones (tiled)
            batch_spec(a_dim + 1),                              # action^T + ones (tiled)
            resident((h1p, s_dim + 1)),                         # [W1^T | b1]  (resident)
            resident((h2p, h1p)),                               # W2a^T
            resident((h2p, a_dim + 1)),                         # [W2b^T | b2]
            resident((1, h2p)),                                 # w3 row
            pl.BlockSpec(memory_space=pltpu.MemorySpace.SMEM),  # b3 scalar
        ],
        out_specs=pl.BlockSpec((1, tb), lambda i: (0, i)),
        compiler_params=pltpu.CompilerParams(
            dimension_semantics=("parallel",),
        ),
    )(s_aug, a_aug,
      kparams["w1_aug"], kparams["w2a_t"], kparams["w2b_aug"],
      kparams["w3_row"], kparams["b3"])

    return out[0, :B].reshape(B, 1)


def critic_reference(state, action, raw):
    # Pure-JAX reference matching the PyTorch forward exactly.
    x = jnp.maximum(state @ raw["w1"] + raw["b1"], 0.0)
    xa = jnp.concatenate([x, action], axis=1)
    y = jnp.maximum(xa @ raw["w2"] + raw["b2"], 0.0)
    return y @ raw["w3"] + raw["b3"]


if __name__ == "__main__":
    key = jax.random.PRNGKey(0)
    k_params, k_state, k_action = jax.random.split(key, 3)

    raw = init_params(k_params)
    kparams = pack_params(raw)

    # Small deterministic check (batch=2, single grid step).
    batch = 2
    state = jax.random.normal(k_state, (batch, STATE_DIM), jnp.float32)
    action = jax.random.normal(k_action, (batch, ACTION_DIM), jnp.float32)
    out = jax.block_until_ready(critic_forward(state, action, kparams))
    ref = critic_reference(state, action, raw)
    assert out.shape == (batch, 1)
    assert jnp.allclose(out, ref, atol=5e-4, rtol=1e-3), (
        float(jnp.max(jnp.abs(out - ref))))

    # Larger, non-tile-multiple batch to exercise the tiled / padded grid path.
    batch2 = 640
    k_s2, k_a2 = jax.random.split(k_state)
    state2 = jax.random.normal(k_s2, (batch2, STATE_DIM), jnp.float32)
    action2 = jax.random.normal(k_a2, (batch2, ACTION_DIM), jnp.float32)
    out2 = jax.block_until_ready(critic_forward(state2, action2, kparams))
    ref2 = critic_reference(state2, action2, raw)
    assert out2.shape == (batch2, 1)
    assert jnp.allclose(out2, ref2, atol=5e-4, rtol=1e-3), (
        float(jnp.max(jnp.abs(out2 - ref2))))

    print("KERNEL_OK")
</pallas_src>

<mosaic_0001>
module attributes {stable_mosaic.version = 11 : i64} {
  func.func @critic_kernel(%arg0: i32, %arg1: memref<12x8xf32, #tpu.memory_space<vmem>>, %arg2: memref<4x8xf32, #tpu.memory_space<vmem>>, %arg3: memref<512x12xf32, #tpu.memory_space<vmem>>, %arg4: memref<384x512xf32, #tpu.memory_space<vmem>>, %arg5: memref<384x4xf32, #tpu.memory_space<vmem>>, %arg6: memref<1x384xf32, #tpu.memory_space<vmem>>, %arg7: memref<1x1xf32, #tpu.memory_space<smem>>, %arg8: memref<1x8xf32, #tpu.memory_space<vmem>>) attributes {dimension_semantics = [#tpu.dimension_semantics<parallel>], iteration_bounds = array<i64: 1>, scalar_prefetch = 0 : i64, scratch_operands = 0 : i64, tpu.core_type = #tpu.core_type<tc>, window_params = [{transform_indices = @transform_0, window_bounds = array<i64: 12, 8>}, {transform_indices = @transform_1, window_bounds = array<i64: 4, 8>}, {pipeline_mode = #tpu.pipeline_mode<synchronous>, transform_indices = @transform_2, window_bounds = array<i64: 512, 12>}, {pipeline_mode = #tpu.pipeline_mode<synchronous>, transform_indices = @transform_3, window_bounds = array<i64: 384, 512>}, {pipeline_mode = #tpu.pipeline_mode<synchronous>, transform_indices = @transform_4, window_bounds = array<i64: 384, 4>}, {pipeline_mode = #tpu.pipeline_mode<synchronous>, transform_indices = @transform_5, window_bounds = array<i64: 1, 384>}, {transform_indices = @transform_6, window_bounds = array<i64: 1, 1>}, {transform_indices = @transform_7, window_bounds = array<i64: 1, 8>}]} {
    %c0 = arith.constant 0 : index
    %c0_0 = arith.constant 0 : index
    %0 = vector.load %arg3[%c0, %c0_0] : memref<512x12xf32, #tpu.memory_space<vmem>>, vector<512x12xf32>
    %c0_1 = arith.constant 0 : index
    %c0_2 = arith.constant 0 : index
    %1 = vector.load %arg1[%c0_1, %c0_2] : memref<12x8xf32, #tpu.memory_space<vmem>>, vector<12x8xf32>
    %cst = arith.constant dense<0.000000e+00> : vector<512x8xf32>
    %2 = tpu.matmul %0, %1, %cst {dimension_numbers = #tpu.dot_dimension_numbers<[1], [0], [0], [1], [0, 0, 1, 1], [], []>} : vector<512x12xf32>, vector<12x8xf32>, vector<512x8xf32> -> vector<512x8xf32>
    %cst_3 = arith.constant 0.000000e+00 : f32
    %3 = vector.broadcast %cst_3 : f32 to vector<512x8xf32>
    %4 = arith.maximumf %2, %3 : vector<512x8xf32>
    %c0_4 = arith.constant 0 : index
    %c0_5 = arith.constant 0 : index
    %5 = vector.load %arg4[%c0_4, %c0_5] : memref<384x512xf32, #tpu.memory_space<vmem>>, vector<384x512xf32>
    %cst_6 = arith.constant dense<0.000000e+00> : vector<384x8xf32>
    %6 = tpu.matmul %5, %4, %cst_6 {dimension_numbers = #tpu.dot_dimension_numbers<[1], [0], [0], [1], [0, 0, 1, 1], [], []>} : vector<384x512xf32>, vector<512x8xf32>, vector<384x8xf32> -> vector<384x8xf32>
    %c0_7 = arith.constant 0 : index
    %c0_8 = arith.constant 0 : index
    %7 = vector.load %arg5[%c0_7, %c0_8] : memref<384x4xf32, #tpu.memory_space<vmem>>, vector<384x4xf32>
    %c0_9 = arith.constant 0 : index
    %c0_10 = arith.constant 0 : index
    %8 = vector.load %arg2[%c0_9, %c0_10] : memref<4x8xf32, #tpu.memory_space<vmem>>, vector<4x8xf32>
    %cst_11 = arith.constant dense<0.000000e+00> : vector<384x8xf32>
    %9 = tpu.matmul %7, %8, %cst_11 {dimension_numbers = #tpu.dot_dimension_numbers<[1], [0], [0], [1], [0, 0, 1, 1], [], []>} : vector<384x4xf32>, vector<4x8xf32>, vector<384x8xf32> -> vector<384x8xf32>
    %10 = arith.addf %6, %9 : vector<384x8xf32>
    %cst_12 = arith.constant 0.000000e+00 : f32
    %11 = vector.broadcast %cst_12 : f32 to vector<384x8xf32>
    %12 = arith.maximumf %10, %11 : vector<384x8xf32>
    %c0_13 = arith.constant 0 : index
    %c0_14 = arith.constant 0 : index
    %13 = vector.load %arg6[%c0_13, %c0_14] : memref<1x384xf32, #tpu.memory_space<vmem>>, vector<1x384xf32>
    %cst_15 = arith.constant dense<0.000000e+00> : vector<1x8xf32>
    %14 = tpu.matmul %13, %12, %cst_15 {dimension_numbers = #tpu.dot_dimension_numbers<[1], [0], [0], [1], [0, 0, 1, 1], [], []>} : vector<1x384xf32>, vector<384x8xf32>, vector<1x8xf32> -> vector<1x8xf32>
    %c0_16 = arith.constant 0 : index
    %c0_17 = arith.constant 0 : index
    %15 = memref.load %arg7[%c0_16, %c0_17] : memref<1x1xf32, #tpu.memory_space<smem>>
    %16 = vector.broadcast %15 : f32 to vector<1x8xf32>
    %17 = arith.addf %14, %16 : vector<1x8xf32>
    %c0_18 = arith.constant 0 : index
    %c0_19 = arith.constant 0 : index
    %18 = vector.load %arg8[%c0_18, %c0_19] : memref<1x8xf32, #tpu.memory_space<vmem>>, vector<1x8xf32>
    tpu.vector_store %arg8[%c0_18, %c0_19], %17 {strides = array<i32>} : memref<1x8xf32, #tpu.memory_space<vmem>>, vector<1x8xf32>,
    return
  }
  func.func @transform_0(%arg0: i32) -> (i32, i32) {
    %c0_i32 = arith.constant 0 : i32
    %c0_i32_0 = arith.constant 0 : i32
    return %c0_i32, %arg0 : i32, i32
  }
  func.func @transform_1(%arg0: i32) -> (i32, i32) {
    %c0_i32 = arith.constant 0 : i32
    %c0_i32_0 = arith.constant 0 : i32
    return %c0_i32, %arg0 : i32, i32
  }
  func.func @transform_2(%arg0: i32) -> (i32, i32) {
    %c0_i32 = arith.constant 0 : i32
    %c0_i32_0 = arith.constant 0 : i32
    %c0_i32_1 = arith.constant 0 : i32
    return %c0_i32, %c0_i32_0 : i32, i32
  }
  func.func @transform_3(%arg0: i32) -> (i32, i32) {
    %c0_i32 = arith.constant 0 : i32
    %c0_i32_0 = arith.constant 0 : i32
    %c0_i32_1 = arith.constant 0 : i32
    return %c0_i32, %c0_i32_0 : i32, i32
  }
  func.func @transform_4(%arg0: i32) -> (i32, i32) {
    %c0_i32 = arith.constant 0 : i32
    %c0_i32_0 = arith.constant 0 : i32
    %c0_i32_1 = arith.constant 0 : i32
    return %c0_i32, %c0_i32_0 : i32, i32
  }
  func.func @transform_5(%arg0: i32) -> (i32, i32) {
    %c0_i32 = arith.constant 0 : i32
    %c0_i32_0 = arith.constant 0 : i32
    %c0_i32_1 = arith.constant 0 : i32
    return %c0_i32, %c0_i32_0 : i32, i32
  }
  func.func @transform_6(%arg0: i32) -> (i32, i32) {
    %c0_i32 = arith.constant 0 : i32
    %c0_i32_0 = arith.constant 0 : i32
    %c0_i32_1 = arith.constant 0 : i32
    return %c0_i32, %c0_i32_0 : i32, i32
  }
  func.func @transform_7(%arg0: i32) -> (i32, i32) {
    %c0_i32 = arith.constant 0 : i32
    %c0_i32_0 = arith.constant 0 : i32
    return %c0_i32, %arg0 : i32, i32
  }
}

</mosaic_0001>

<bundles_post_ra>
// kernel: tpu_custom_call.1
= control target key start
LH: loop header
LB: loop body
LE: loop exit
PB: predicated region body
PF: predicated region fallthrough
CT: control target
= control target key end

     0   :  { %13 = vsyncpa [#allocation4], 0  ;;  %s3892_s0 = inlined_call_operand.vmem [shape: f32[12,8], index: 0, kind: input, shape index: {}]   ;;  %s3893_s1 = inlined_call_operand.vmem [shape: f32[4,8], index: 1, kind: input, shape index: {}]   ;;  %s3894_s2 = inlined_call_operand.vmem [shape: f32[512,12], index: 2, kind: input, shape index: {}]   ;;  %s3895_s3 = inlined_call_operand.hbm [shape: f32[384,512], index: 3, kind: input, shape index: {}]   ;;  %s3896_s4 = inlined_call_operand.vmem [shape: f32[384,4], index: 4, kind: input, shape index: {}]   ;;  %s3897_s5 = inlined_call_operand.vmem [shape: f32[1,384], index: 5, kind: input, shape index: {}]   ;;  %s3898_s6 = inlined_call_operand.<no memory space> [shape: f32[1,1], index: 6, kind: input, shape index: {}]   ;;  %s3899_s7 = inlined_call_operand.hbm [shape: f32[1,8], index: 7, kind: output, shape index: {}]  }
   0x1   :  { %14 = vsyncpa [#allocation5], 0  ;;  %s2986_s24 = smov [#allocation3]   ;;  %s2938_s28 = scalar_lea.hbm %s3895_s3, 24576 }
   0x2   :  { %s26_s25 = sshll.u32 %s2986_s24, 4  ;;  %p2939_p0 = scmp.ne.s32.totalorder %s3895_s3, %s2938_s28  ;;  %s27_s25 = int_to_ptr.vmem [resolvable:$true] %s26_s25 }
   0x3   :  { %p2942_p1 = scmp.lt.u32.totalorder %s2938_s28, %s3895_s3 }
   0x5   :  { %p2944_p2 = pnand %p2942_p1, %p2939_p0 }
   0x7   :  { %2947 = shalt.err (!%p2944_p2)
}
   0x8   :  { %s2948_s10 = scalar_lea.vmem %s27_s25, 24576  ;;  %p2953_p4 = scmp.lt.s32.totalorder %s27_s25, %s27_s25 }
   0x9   :  { %p2949_p3 = scmp.ne.s32.totalorder %s27_s25, %s2948_s10  ;;  %p2954_p5 = scmp.lt.s32.totalorder %s2948_s10, %s2948_s10 }
   0xb   :  { %p2955_p6 = por %p2954_p5, %p2953_p4 }
   0xd   :  { %p2956_p7 = pnand %p2955_p6, %p2949_p3 }
   0xf   :  { %2959 = shalt.err (!%p2956_p7)
}
  0x10   :  { %s2987_s11 = smov 512   ;;  %s2988_s12 = smov 32  }
  0x11   :  { %32 = dma.hbm_to_vmem [thread:$0]  %s3895_s3, 24576, %s27_s25, [#allocation4], %s2987_s11, %s2987_s11, %s2988_s12  }
  0x12   :  { %2982 = dma.done.wait [#allocation4], 24576  }
  0x13   :  { %2983 = vsyncadd [#allocation4], 4294942720  ;;  %vm301_vm0 = vcmask 1043456   ;;  %vm108_vm1 = vcmask 97280   ;;  %vm2989_vm2 = vmmov 1   ;;  %v106_v0 = vld [vmem:[%s3892_s0] sm:$0xff] }
  0x14   :  { %vm2773_vm3 = vmpackc.low %vm301_vm0, %vm2989_vm2  ;;  %v107_v1 = vld [vmem:[%s3892_s0 + $0x8] sm:$0xf]  ;;  %v42_v2 = vld [vmem:[%s3894_s2] sm:$0xff]  ;;  %vm995_vm4 = vcmask 31744   ;;  %vm2991_vm5 = vmmov 0   ;;  %s2993_s13 = smov [#allocation6]  }
  0x15   :  { %v2772_v3 = vpack.c.bf16 %v107_v1, %v106_v0  ;;  %2567 = vmatprep.mubr.msk.f32.mxu0 %vm108_vm1, %v42_v2  ;;  %v43_v4 = vld [vmem:[%s3894_s2 + $0x8] sm:$0xff]  ;;  %v44_v5 = vld [vmem:[%s3894_s2 + $0x10] sm:$0xff]  ;;  %v45_v6 = vld [vmem:[%s3894_s2 + $0x18] sm:$0xff]  ;;  %s2273_s14 = sshll.u32 %s2993_s13, 4  ;;  %vm2265_vm6 = vcmask 57344   ;;  %s2274_s14 = int_to_ptr.vmem [resolvable:$true] %s2273_s14 }
  0x16   :  { %v46_v7 = vld [vmem:[%s3894_s2 + $0x20] sm:$0xff]  ;;  %v47_v8 = vld [vmem:[%s3894_s2 + $0x28] sm:$0xff]  ;;  %v48_v9 = vld [vmem:[%s3894_s2 + $0x30] sm:$0xff]  ;;  %s2960_s15 = scalar_lea.vmem %s2274_s14, 16  ;;  %p2965_p9 = scmp.lt.s32.totalorder %s2274_s14, %s2274_s14 }
  0x17   :  { %2774 = vmatprep.subr.msk.bf16.mxu0 %vm2773_vm3, %v2772_v3  ;;  %v49_v10 = vld [vmem:[%s3894_s2 + $0x38] sm:$0xff]  ;;  %v50_v11 = vld [vmem:[%s3894_s2 + $0x40] sm:$0xff]  ;;  %v51_v12 = vld [vmem:[%s3894_s2 + $0x48] sm:$0xff]  ;;  %p2961_p8 = scmp.ne.s32.totalorder %s2274_s14, %s2960_s15 }
  0x18   :  { %2777 = vmatpush3.bf16.msk.msra.mxu0 %vm2773_vm3, %v2772_v3  ;;  %v52_v13 = vld [vmem:[%s3894_s2 + $0x50] sm:$0xff]  ;;  %v994_v14 = vld [vmem:[%s3893_s1] sm:$0xf]  ;;  %v947_v16 = vld [vmem:[%s3896_s4 + $0x8] sm:$0xff] }
  0x19   :  { %v946_v15 = vld [vmem:[%s3896_s4] sm:$0xff]  ;;  %2663 = vmatprep.subr.msk.mxu1 %vm301_vm0, %v994_v14  ;;  %v53_v17 = vld [vmem:[%s3894_s2 + $0x58] sm:$0xff]  ;;  %v948_v18 = vld [vmem:[%s3896_s4 + $0x10] sm:$0xff] }
  0x1a   :  { %2664 = vmatpush3.msk.msra.mxu1 %vm301_vm0, %v994_v14  ;;  %v54_v19 = vld [vmem:[%s3894_s2 + $0x60] sm:$0xff]  ;;  %2665 = vmatprep.mubr.msk.f32.mxu1 %vm995_vm4, %v946_v15  ;;  %v949_v20 = vld [vmem:[%s3896_s4 + $0x18] sm:$0xff]  ;;  %v55_v21 = vld [vmem:[%s3894_s2 + $0x68] sm:$0xff] }
  0x1b   :  { %2568 = vmatmul.mubr.msk.f32.vlgmr.msra.gmra.mrb[0].mxu0 %vm108_vm1, %v43_v4  ;;  %2666 = vmatmul.mubr.msk.f32.vlgmr.msra.gmra.mrb[0].mxu1 %vm995_vm4, %v947_v16  ;;  %v950_v22 = vld [vmem:[%s3896_s4 + $0x20] sm:$0xff]  ;;  %v56_v23 = vld [vmem:[%s3894_s2 + $0x70] sm:$0xff]  ;;  %v951_v24 = vld [vmem:[%s3896_s4 + $0x28] sm:$0xff] }
  0x1c   :  { %2570 = vmatprep.mubr.msk.f32.mxu0 %vm108_vm1, %v44_v5  ;;  %2668 = vmatprep.mubr.msk.f32.mxu1 %vm995_vm4, %v948_v18  ;;  %v57_v25 = vld [vmem:[%s3894_s2 + $0x78] sm:$0xff]  ;;  %v952_v26 = vld [vmem:[%s3896_s4 + $0x30] sm:$0xff]  ;;  %v58_v27 = vld [vmem:[%s3894_s2 + $0x80] sm:$0xff] }
  0x1d   :  { %v953_v28 = vld [vmem:[%s3896_s4 + $0x38] sm:$0xff]  ;;  %v59_v29 = vld [vmem:[%s3894_s2 + $0x88] sm:$0xff]  ;;  %v954_v30 = vld [vmem:[%s3896_s4 + $0x40] sm:$0xff] }
  0x1e   :  { %v60_v31 = vld [vmem:[%s3894_s2 + $0x90] sm:$0xff]  ;;  %v955_v32 = vld [vmem:[%s3896_s4 + $0x48] sm:$0xff]  ;;  %v61_v33 = vld [vmem:[%s3894_s2 + $0x98] sm:$0xff] }
  0x1f   :  { %2571 = vmatmul.mubr.msk.f32.gmra.mrb[2].mxu0 %vm108_vm1, %v45_v6  ;;  %2669 = vmatmul.mubr.msk.f32.gmra.mrb[2].mxu1 %vm995_vm4, %v949_v20  ;;  %v956_v34 = vld [vmem:[%s3896_s4 + $0x50] sm:$0xff]  ;;  %v62_v35 = vld [vmem:[%s3894_s2 + $0xa0] sm:$0xff]  ;;  %v957_v36 = vld [vmem:[%s3896_s4 + $0x58] sm:$0xff]  ;;  %v3900_v6 = vmov 0.0|0.0  }
  0x20   :  { %2573 = vmatprep.mubr.msk.f32.mxu0 %vm108_vm1, %v46_v7  ;;  %2671 = vmatprep.mubr.msk.f32.mxu1 %vm995_vm4, %v950_v22  ;;  %v63_v37 = vld [vmem:[%s3894_s2 + $0xa8] sm:$0xff]  ;;  %v958_v38 = vld [vmem:[%s3896_s4 + $0x60] sm:$0xff]  ;;  %v64_v39 = vld [vmem:[%s3894_s2 + $0xb0] sm:$0xff] }
  0x21   :  { %v959_v40 = vld [vmem:[%s3896_s4 + $0x68] sm:$0xff]  ;;  %v65_v41 = vld [vmem:[%s3894_s2 + $0xb8] sm:$0xff]  ;;  %v66_v42 = vld [vmem:[%s3894_s2 + $0xc0] sm:$0xff]  ;;  %2778 = vmatprep.subr.bf16.mxu1 %v3900_v6  ;;  %2826 = vmatprep.subr.bf16.mxu0 %v3900_v6 }
  0x22   :  { %v67_v43 = vld [vmem:[%s3894_s2 + $0xc8] sm:$0xff]  ;;  %v68_v44 = vld [vmem:[%s3894_s2 + $0xd0] sm:$0xff]  ;;  %v69_v45 = vld [vmem:[%s3894_s2 + $0xd8] sm:$0xff] }
  0x23   :  { %2574 = vmatmul.mubr.msk.f32.gmra.mrb[4].mxu0 %vm108_vm1, %v47_v8  ;;  %2672 = vmatmul.mubr.msk.f32.gmra.mrb[4].mxu1 %vm995_vm4, %v951_v24  ;;  %v70_v46 = vld [vmem:[%s3894_s2 + $0xe0] sm:$0xff]  ;;  %v71_v47 = vld [vmem:[%s3894_s2 + $0xe8] sm:$0xff]  ;;  %v72_v48 = vld [vmem:[%s3894_s2 + $0xf0] sm:$0xff] }
  0x24   :  { %2576 = vmatprep.mubr.msk.f32.mxu0 %vm108_vm1, %v48_v9  ;;  %2674 = vmatprep.mubr.msk.f32.mxu1 %vm995_vm4, %v952_v26  ;;  %v73_v49 = vld [vmem:[%s3894_s2 + $0xf8] sm:$0xff]  ;;  %v74_v50 = vld [vmem:[%s3894_s2 + $0x100] sm:$0xff]  ;;  %v75_v51 = vld [vmem:[%s3894_s2 + $0x108] sm:$0xff] }
  0x25   :  { %v76_v52 = vld [vmem:[%s3894_s2 + $0x110] sm:$0xff]  ;;  %v77_v53 = vld [vmem:[%s3894_s2 + $0x118] sm:$0xff]  ;;  %v78_v54 = vld [vmem:[%s3894_s2 + $0x120] sm:$0xff] }
  0x26   :  { %v79_v55 = vld [vmem:[%s3894_s2 + $0x128] sm:$0xff]  ;;  %v80_v56 = vld [vmem:[%s3894_s2 + $0x130] sm:$0xff]  ;;  %v81_v57 = vld [vmem:[%s3894_s2 + $0x138] sm:$0xff] }
  0x27   :  { %2577 = vmatmul.mubr.msk.f32.gmra.mrb[6].mxu0 %vm108_vm1, %v49_v10  ;;  %2675 = vmatmul.mubr.msk.f32.gmra.mrb[6].mxu1 %vm995_vm4, %v953_v28  ;;  %v82_v58 = vld [vmem:[%s3894_s2 + $0x140] sm:$0xff]  ;;  %v83_v59 = vld [vmem:[%s3894_s2 + $0x148] sm:$0xff]  ;;  %v84_v60 = vld [vmem:[%s3894_s2 + $0x150] sm:$0xff] }
  0x28   :  { %2579 = vmatprep.mubr.msk.f32.mxu0 %vm108_vm1, %v50_v11  ;;  %2677 = vmatprep.mubr.msk.f32.mxu1 %vm995_vm4, %v954_v30  ;;  %v85_v61 = vld [vmem:[%s3894_s2 + $0x158] sm:$0xff]  ;;  %v86_v62 = vld [vmem:[%s3894_s2 + $0x160] sm:$0xff]  ;;  %v960_v63 = vld [vmem:[%s3896_s4 + $0x70] sm:$0xff] }
  0x29   :  { %v961_v0 = vld [vmem:[%s3896_s4 + $0x78] sm:$0xff]  ;;  %v87_v1 = vld [vmem:[%s3894_s2 + $0x168] sm:$0xff]  ;;  %v88_v2 = vld [vmem:[%s3894_s2 + $0x170] sm:$0xff] }
  0x2a   :  { %v962_v3 = vld [vmem:[%s3896_s4 + $0x80] sm:$0xff]  ;;  %v963_v4 = vld [vmem:[%s3896_s4 + $0x88] sm:$0xff]  ;;  %v89_v5 = vld [vmem:[%s3894_s2 + $0x178] sm:$0xff] }
  0x2b   :  { %2580 = vmatmul.mubr.msk.f32.gmra.mrb[8].mxu0 %vm108_vm1, %v51_v12  ;;  %2678 = vmatmul.mubr.msk.f32.gmra.mrb[8].mxu1 %vm995_vm4, %v955_v32  ;;  %v90_v7 = vld [vmem:[%s3894_s2 + $0x180] sm:$0xff]  ;;  %v964_v8 = vld [vmem:[%s3896_s4 + $0x90] sm:$0xff]  ;;  %v965_v9 = vld [vmem:[%s3896_s4 + $0x98] sm:$0xff] }
  0x2c   :  { %2582 = vmatprep.mubr.msk.f32.mxu0 %vm108_vm1, %v52_v13  ;;  %2680 = vmatprep.mubr.msk.f32.mxu1 %vm995_vm4, %v956_v34  ;;  %v91_v10 = vld [vmem:[%s3894_s2 + $0x188] sm:$0xff]  ;;  %v92_v11 = vld [vmem:[%s3894_s2 + $0x190] sm:$0xff]  ;;  %v966_v12 = vld [vmem:[%s3896_s4 + $0xa0] sm:$0xff] }
  0x2d   :  { %v967_v13 = vld [vmem:[%s3896_s4 + $0xa8] sm:$0xff]  ;;  %v93_v14 = vld [vmem:[%s3894_s2 + $0x198] sm:$0xff]  ;;  %v94_v15 = vld [vmem:[%s3894_s2 + $0x1a0] sm:$0xff] }
  0x2e   :  { %v968_v16 = vld [vmem:[%s3896_s4 + $0xb0] sm:$0xff]  ;;  %v95_v18 = vld [vmem:[%s3894_s2 + $0x1a8] sm:$0xff]  ;;  %v970_v20 = vld [vmem:[%s3896_s4 + $0xc0] sm:$0xff] }
  0x2f   :  { %2583 = vmatmul.mubr.msk.f32.gmra.mrb[10].mxu0 %vm108_vm1, %v53_v17  ;;  %2681 = vmatmul.mubr.msk.f32.gmra.mrb[10].mxu1 %vm995_vm4, %v957_v36  ;;  %v969_v17 = vld [vmem:[%s3896_s4 + $0xb8] sm:$0xff]  ;;  %v972_v24 = vld [vmem:[%s3896_s4 + $0xd0] sm:$0xff]  ;;  %v99_v26 = vld [vmem:[%s3894_s2 + $0x1c8] sm:$0xff] }
  0x30   :  { %2585 = vmatprep.mubr.msk.f32.mxu0 %vm108_vm1, %v54_v19  ;;  %2683 = vmatprep.mubr.msk.f32.mxu1 %vm995_vm4, %v958_v38  ;;  %v96_v19 = vld [vmem:[%s3894_s2 + $0x1b0] sm:$0xff]  ;;  %v97_v22 = vld [vmem:[%s3894_s2 + $0x1b8] sm:$0xff]  ;;  %v974_v28 = vld [vmem:[%s3896_s4 + $0xe0] sm:$0xff] }
  0x31   :  { %v101_v30 = vld [vmem:[%s3894_s2 + $0x1d8] sm:$0xff]  ;;  %v976_v32 = vld [vmem:[%s3896_s4 + $0xf0] sm:$0xff]  ;;  %v103_v34 = vld [vmem:[%s3894_s2 + $0x1e8] sm:$0xff] }
  0x32   :  { %v978_v36 = vld [vmem:[%s3896_s4 + $0x100] sm:$0xff]  ;;  %v105_v38 = vld [vmem:[%s3894_s2 + $0x1f8] sm:$0xff] }
  0x33   :  { %2586 = vmatmul.mubr.msk.f32.gmra.mrb[12].mxu0 %vm108_vm1, %v55_v21  ;;  %2684 = vmatmul.mubr.msk.f32.gmra.mrb[12].mxu1 %vm995_vm4, %v959_v40  ;;  %v971_v21 = vld [vmem:[%s3896_s4 + $0xc8] sm:$0xff]  ;;  %v981_v40 = vld [vmem:[%s3896_s4 + $0x118] sm:$0xff] }
  0x34   :  { %2588 = vmatprep.mubr.msk.f32.mxu0 %vm108_vm1, %v56_v23  ;;  %2686 = vmatprep.mubr.msk.f32.mxu1 %vm995_vm4, %v960_v63  ;;  %v98_v23 = vld [vmem:[%s3894_s2 + $0x1c0] sm:$0xff] }
  0x37   :  { %2589 = vmatmul.mubr.msk.f32.gmra.mrb[14].mxu0 %vm108_vm1, %v57_v25  ;;  %2687 = vmatmul.mubr.msk.f32.gmra.mrb[14].mxu1 %vm995_vm4, %v961_v0  ;;  %v973_v25 = vld [vmem:[%s3896_s4 + $0xd8] sm:$0xff] }
  0x38   :  { %2591 = vmatprep.mubr.msk.f32.mxu0 %vm108_vm1, %v58_v27  ;;  %2689 = vmatprep.mubr.msk.f32.mxu1 %vm995_vm4, %v962_v3  ;;  %v100_v27 = vld [vmem:[%s3894_s2 + $0x1d0] sm:$0xff] }
  0x3b   :  { %2592 = vmatmul.mubr.msk.f32.gmra.mrb[16].mxu0 %vm108_vm1, %v59_v29  ;;  %2690 = vmatmul.mubr.msk.f32.gmra.mrb[16].mxu1 %vm995_vm4, %v963_v4  ;;  %v975_v29 = vld [vmem:[%s3896_s4 + $0xe8] sm:$0xff] }
  0x3c   :  { %2594 = vmatprep.mubr.msk.f32.mxu0 %vm108_vm1, %v60_v31  ;;  %2692 = vmatprep.mubr.msk.f32.mxu1 %vm995_vm4, %v964_v8  ;;  %v102_v31 = vld [vmem:[%s3894_s2 + $0x1e0] sm:$0xff] }
  0x3f   :  { %2595 = vmatmul.mubr.msk.f32.gmra.mrb[18].mxu0 %vm108_vm1, %v61_v33  ;;  %2693 = vmatmul.mubr.msk.f32.gmra.mrb[18].mxu1 %vm995_vm4, %v965_v9  ;;  %v977_v33 = vld [vmem:[%s3896_s4 + $0xf8] sm:$0xff] }
  0x40   :  { %2597 = vmatprep.mubr.msk.f32.mxu0 %vm108_vm1, %v62_v35  ;;  %2695 = vmatprep.mubr.msk.f32.mxu1 %vm995_vm4, %v966_v12  ;;  %v104_v35 = vld [vmem:[%s3894_s2 + $0x1f0] sm:$0xff]  ;;  %s2964_s2 = scalar_lea.vmem %s2274_s14, 32 }
  0x41   :  { %p2966_p10 = scmp.lt.s32.totalorder %s2964_s2, %s2960_s15 }
  0x43   :  { %2598 = vmatmul.mubr.msk.f32.gmra.mrb[20].mxu0 %vm108_vm1, %v63_v37  ;;  %2696 = vmatmul.mubr.msk.f32.gmra.mrb[20].mxu1 %vm995_vm4, %v967_v13  ;;  %v979_v37 = vld [vmem:[%s3896_s4 + $0x108] sm:$0xff]  ;;  %p2967_p11 = por %p2966_p10, %p2965_p9 }
  0x44   :  { %2600 = vmatprep.mubr.msk.f32.mxu0 %vm108_vm1, %v64_v39  ;;  %2698 = vmatprep.mubr.msk.f32.mxu1 %vm995_vm4, %v968_v16  ;;  %v980_v39 = vld [vmem:[%s3896_s4 + $0x110] sm:$0xff] }
  0x45   :  { %p2968_p12 = pnand %p2967_p11, %p2961_p8 }
  0x47   :  { %2601 = vmatmul.mubr.msk.f32.gmra.mrb[22].mxu0 %vm108_vm1, %v65_v41  ;;  %2699 = vmatmul.mubr.msk.f32.gmra.mrb[22].mxu1 %vm995_vm4, %v969_v17  ;;  %v982_v41 = vld [vmem:[%s3896_s4 + $0x120] sm:$0xff] }
  0x48   :  { %2603 = vmatprep.mubr.msk.f32.mxu0 %vm108_vm1, %v66_v42  ;;  %2701 = vmatprep.mubr.msk.f32.mxu1 %vm995_vm4, %v970_v20  ;;  %v983_v42 = vld [vmem:[%s3896_s4 + $0x128] sm:$0xff] }
  0x4b   :  { %2604 = vmatmul.mubr.msk.f32.gmra.mrb[24].mxu0 %vm108_vm1, %v67_v43  ;;  %2702 = vmatmul.mubr.msk.f32.gmra.mrb[24].mxu1 %vm995_vm4, %v971_v21  ;;  %v984_v43 = vld [vmem:[%s3896_s4 + $0x130] sm:$0xff] }
  0x4c   :  { %2606 = vmatprep.mubr.msk.f32.mxu0 %vm108_vm1, %v68_v44  ;;  %2704 = vmatprep.mubr.msk.f32.mxu1 %vm995_vm4, %v972_v24  ;;  %v985_v44 = vld [vmem:[%s3896_s4 + $0x138] sm:$0xff] }
  0x4f   :  { %2607 = vmatmul.mubr.msk.f32.gmra.mrb[26].mxu0 %vm108_vm1, %v69_v45  ;;  %2705 = vmatmul.mubr.msk.f32.gmra.mrb[26].mxu1 %vm995_vm4, %v973_v25  ;;  %v986_v45 = vld [vmem:[%s3896_s4 + $0x140] sm:$0xff] }
  0x50   :  { %2609 = vmatprep.mubr.msk.f32.mxu0 %vm108_vm1, %v70_v46  ;;  %2707 = vmatprep.mubr.msk.f32.mxu1 %vm995_vm4, %v974_v28  ;;  %v987_v46 = vld [vmem:[%s3896_s4 + $0x148] sm:$0xff] }
  0x53   :  { %2610 = vmatmul.mubr.msk.f32.gmra.mrb[28].mxu0 %vm108_vm1, %v71_v47  ;;  %2708 = vmatmul.mubr.msk.f32.gmra.mrb[28].mxu1 %vm995_vm4, %v975_v29  ;;  %v988_v47 = vld [vmem:[%s3896_s4 + $0x150] sm:$0xff] }
  0x54   :  { %2612 = vmatprep.mubr.msk.f32.mxu0 %vm108_vm1, %v72_v48  ;;  %2710 = vmatprep.mubr.msk.f32.mxu1 %vm995_vm4, %v976_v32  ;;  %v989_v48 = vld [vmem:[%s3896_s4 + $0x158] sm:$0xff] }
  0x57   :  { %2613 = vmatmul.mubr.msk.f32.gmra.mrb[30].mxu0 %vm108_vm1, %v73_v49  ;;  %2711 = vmatmul.mubr.msk.f32.gmra.mrb[30].mxu1 %vm995_vm4, %v977_v33  ;;  %v990_v49 = vld [vmem:[%s3896_s4 + $0x160] sm:$0xff] }
  0x58   :  { %2615 = vmatprep.mubr.msk.f32.mxu0 %vm108_vm1, %v74_v50  ;;  %2713 = vmatprep.mubr.msk.f32.mxu1 %vm995_vm4, %v978_v36  ;;  %v991_v50 = vld [vmem:[%s3896_s4 + $0x168] sm:$0xff] }
  0x5b   :  { %2616 = vmatmul.mubr.msk.f32.gmra.mrb[32].mxu0 %vm108_vm1, %v75_v51  ;;  %2714 = vmatmul.mubr.msk.f32.gmra.mrb[32].mxu1 %vm995_vm4, %v979_v37  ;;  %v992_v51 = vld [vmem:[%s3896_s4 + $0x170] sm:$0xff] }
  0x5c   :  { %2618 = vmatprep.mubr.msk.f32.mxu0 %vm108_vm1, %v76_v52  ;;  %2716 = vmatprep.mubr.msk.f32.mxu1 %vm995_vm4, %v980_v39  ;;  %v993_v52 = vld [vmem:[%s3896_s4 + $0x178] sm:$0xff] }
  0x5f   :  { %2619 = vmatmul.mubr.msk.f32.gmra.mrb[34].mxu0 %vm108_vm1, %v77_v53  ;;  %2717 = vmatmul.mubr.msk.f32.gmra.mrb[34].mxu1 %vm995_vm4, %v981_v40  ;;  %v755_v53 = vld [vmem:[#allocation3 + $0x8] sm:$0xff] }
  0x60   :  { %2621 = vmatprep.mubr.msk.f32.mxu0 %vm108_vm1, %v78_v54  ;;  %2719 = vmatprep.mubr.msk.f32.mxu1 %vm995_vm4, %v982_v41 }
  0x63   :  { %2622 = vmatmul.mubr.msk.f32.gmra.mrb[36].mxu0 %vm108_vm1, %v79_v55  ;;  %2720 = vmatmul.mubr.msk.f32.gmra.mrb[36].mxu1 %vm995_vm4, %v983_v42 }
  0x64   :  { %2624 = vmatprep.mubr.msk.f32.mxu0 %vm108_vm1, %v80_v56  ;;  %2722 = vmatprep.mubr.msk.f32.mxu1 %vm995_vm4, %v984_v43 }
  0x67   :  { %2625 = vmatmul.mubr.msk.f32.gmra.mrb[38].mxu0 %vm108_vm1, %v81_v57  ;;  %2723 = vmatmul.mubr.msk.f32.gmra.mrb[38].mxu1 %vm995_vm4, %v985_v44 }
  0x68   :  { %2627 = vmatprep.mubr.msk.f32.mxu0 %vm108_vm1, %v82_v58  ;;  %2725 = vmatprep.mubr.msk.f32.mxu1 %vm995_vm4, %v986_v45  ;;  %v757_v58 = vld [vmem:[#allocation3 + $0x18] sm:$0xff] }
  0x6b   :  { %2628 = vmatmul.mubr.msk.f32.gmra.mrb[40].mxu0 %vm108_vm1, %v83_v59  ;;  %2726 = vmatmul.mubr.msk.f32.gmra.mrb[40].mxu1 %vm995_vm4, %v987_v46 }
  0x6c   :  { %2630 = vmatprep.mubr.msk.f32.mxu0 %vm108_vm1, %v84_v60  ;;  %2728 = vmatprep.mubr.msk.f32.mxu1 %vm995_vm4, %v988_v47 }
  0x6f   :  { %2631 = vmatmul.mubr.msk.f32.gmra.mrb[42].mxu0 %vm108_vm1, %v85_v61  ;;  %2729 = vmatmul.mubr.msk.f32.gmra.mrb[42].mxu1 %vm995_vm4, %v989_v48 }
  0x70   :  { %2633 = vmatprep.mubr.msk.f32.mxu0 %vm108_vm1, %v86_v62  ;;  %2731 = vmatprep.mubr.msk.f32.mxu1 %vm995_vm4, %v990_v49 }
  0x73   :  { %2634 = vmatmul.mubr.msk.f32.gmra.mrb[44].mxu0 %vm108_vm1, %v87_v1  ;;  %2732 = vmatmul.mubr.msk.f32.gmra.mrb[44].mxu1 %vm995_vm4, %v991_v50 }
  0x74   :  { %2636 = vmatprep.mubr.msk.f32.mxu0 %vm108_vm1, %v88_v2  ;;  %2734 = vmatprep.mubr.msk.f32.mxu1 %vm995_vm4, %v992_v51 }
  0x77   :  { %2637 = vmatmul.mubr.msk.f32.gmra.mrb[46].mxu0 %vm108_vm1, %v89_v5  ;;  %2735 = vmatmul.mubr.msk.f32.gmra.mrb[46].mxu1 %vm995_vm4, %v993_v52 }
  0x78   :  { %2639 = vmatprep.mubr.msk.f32.mxu0 %vm108_vm1, %v90_v7  ;;  %1512 = vmatprep.mubr.f32.mxu1 %v755_v53 }
  0x7b   :  { %2640 = vmatmul.mubr.msk.f32.gmra.mrb[48].mxu0 %vm108_vm1, %v91_v10 }
  0x7c   :  { %2642 = vmatprep.mubr.msk.f32.mxu0 %vm108_vm1, %v92_v11 }
  0x7f   :  { %2643 = vmatmul.mubr.msk.f32.gmra.mrb[50].mxu0 %vm108_vm1, %v93_v14 }
  0x80   :  { %2645 = vmatprep.mubr.msk.f32.mxu0 %vm108_vm1, %v94_v15 }
  0x83   :  { %2646 = vmatmul.mubr.msk.f32.gmra.mrb[52].mxu0 %vm108_vm1, %v95_v18 }
  0x84   :  { %2648 = vmatprep.mubr.msk.f32.mxu0 %vm108_vm1, %v96_v19 }
  0x87   :  { %2649 = vmatmul.mubr.msk.f32.gmra.mrb[54].mxu0 %vm108_vm1, %v97_v22 }
  0x88   :  { %2651 = vmatprep.mubr.msk.f32.mxu0 %vm108_vm1, %v98_v23 }
  0x8b   :  { %2652 = vmatmul.mubr.msk.f32.gmra.mrb[56].mxu0 %vm108_vm1, %v99_v26 }
  0x8c   :  { %2654 = vmatprep.mubr.msk.f32.mxu0 %vm108_vm1, %v100_v27 }
  0x8f   :  { %2655 = vmatmul.mubr.msk.f32.gmra.mrb[58].mxu0 %vm108_vm1, %v101_v30 }
  0x90   :  { %2657 = vmatprep.mubr.msk.f32.mxu0 %vm108_vm1, %v102_v31 }
  0x93   :  { %2658 = vmatmul.mubr.msk.f32.gmra.mrb[60].mxu0 %vm108_vm1, %v103_v34 }
  0x94   :  { %2660 = vmatprep.mubr.msk.f32.mxu0 %vm108_vm1, %v104_v35 }
  0x97   :  { %2661 = vmatmul.mubr.msk.f32.gmra.mrb[62].mxu0 %vm108_vm1, %v105_v38 }
  0x98   :  { %1817 = vmatprep.mubr.f32.mxu0 %v757_v58 }
  0xee   :  { %v2569_v54 = vpop.f32.mrb[0].mxu0 }
  0xef   :  { %v691_v55 = vmax.f32 %v2569_v54, 0.0  ;;  %v371_v56 = vpop.f32.mrb[1].mxu0 }
  0xf0   :  { %v690_v57 = vmax.f32 %v371_v56, 0.0 }
  0xf2   :  { %v2779_v59 = vpack.c.bf16 %v691_v55, %v690_v57  ;;  %v2572_v60 = vpop.f32.mrb[2].mxu0 }
  0xf3   :  { %v693_v61 = vmax.f32 %v2572_v60, 0.0  ;;  %v381_v62 = vpop.f32.mrb[3].mxu0 }
  0xf4   :  { %v692_v63 = vmax.f32 %v381_v62, 0.0  ;;  %2780 = vmatpush1.bf16.msra.mxu1 %v2779_v59 }
  0xf5   :  { %2781 = vmatprep.subr.bf16.mxu1 %v3900_v6 }
  0xf6   :  { %v2782_v0 = vpack.c.bf16 %v693_v61, %v692_v63  ;;  %v2575_v1 = vpop.f32.mrb[4].mxu0 }
  0xf7   :  { %v695_v2 = vmax.f32 %v2575_v1, 0.0  ;;  %v391_v3 = vpop.f32.mrb[5].mxu0 }
  0xf8   :  { %v694_v4 = vmax.f32 %v391_v3, 0.0  ;;  %2783 = vmatpush1.bf16.msra.mxu1 %v2782_v0 }
  0xf9   :  { %2784 = vmatprep.subr.bf16.mxu1 %v3900_v6 }
  0xfa   :  { %v2785_v5 = vpack.c.bf16 %v695_v2, %v694_v4  ;;  %v2578_v7 = vpop.f32.mrb[6].mxu0 }
  0xfb   :  { %v697_v8 = vmax.f32 %v2578_v7, 0.0  ;;  %v401_v9 = vpop.f32.mrb[7].mxu0 }
  0xfc   :  { %v696_v10 = vmax.f32 %v401_v9, 0.0  ;;  %2786 = vmatpush1.bf16.msra.mxu1 %v2785_v5 }
  0xfd   :  { %2787 = vmatprep.subr.bf16.mxu1 %v3900_v6 }
  0xfe   :  { %v2788_v11 = vpack.c.bf16 %v697_v8, %v696_v10  ;;  %v2581_v12 = vpop.f32.mrb[8].mxu0 }
  0xff   :  { %v699_v13 = vmax.f32 %v2581_v12, 0.0  ;;  %v411_v14 = vpop.f32.mrb[9].mxu0 }
 0x100   :  { %v698_v15 = vmax.f32 %v411_v14, 0.0  ;;  %2789 = vmatpush1.bf16.msra.mxu1 %v2788_v11  ;;  %v759_v14 = vld [vmem:[#allocation3 + $0x28] sm:$0xff] }
 0x101   :  { %2790 = vmatprep.subr.bf16.mxu1 %v3900_v6 }
 0x102   :  { %v2791_v16 = vpack.c.bf16 %v699_v13, %v698_v15  ;;  %v2584_v17 = vpop.f32.mrb[10].mxu0  ;;  %v754_v13 = vld [vmem:[#allocation3] sm:$0xff] }
 0x103   :  { %v701_v18 = vmax.f32 %v2584_v17, 0.0  ;;  %v421_v19 = vpop.f32.mrb[11].mxu0 }
 0x104   :  { %v700_v20 = vmax.f32 %v421_v19, 0.0  ;;  %2792 = vmatpush1.bf16.msra.mxu1 %v2791_v16 }
 0x105   :  { %2793 = vmatprep.subr.bf16.mxu1 %v3900_v6 }
 0x106   :  { %v2794_v21 = vpack.c.bf16 %v701_v18, %v700_v20  ;;  %v2587_v22 = vpop.f32.mrb[12].mxu0  ;;  %v758_v20 = vld [vmem:[#allocation3 + $0x20] sm:$0xff] }
 0x107   :  { %v703_v23 = vmax.f32 %v2587_v22, 0.0  ;;  %v431_v24 = vpop.f32.mrb[13].mxu0 }
 0x108   :  { %v702_v25 = vmax.f32 %v431_v24, 0.0  ;;  %2795 = vmatpush1.bf16.msra.mxu1 %v2794_v21  ;;  %v763_v21 = vld [vmem:[#allocation3 + $0x48] sm:$0xff] }
 0x109   :  { %2796 = vmatprep.subr.bf16.mxu1 %v3900_v6 }
 0x10a   :  { %v2797_v26 = vpack.c.bf16 %v703_v23, %v702_v25  ;;  %v2590_v27 = vpop.f32.mrb[14].mxu0 }
 0x10b   :  { %v705_v28 = vmax.f32 %v2590_v27, 0.0  ;;  %v441_v29 = vpop.f32.mrb[15].mxu0  ;;  %v762_v27 = vld [vmem:[#allocation3 + $0x40] sm:$0xff] }
 0x10c   :  { %v704_v30 = vmax.f32 %v441_v29, 0.0  ;;  %2798 = vmatpush1.bf16.msra.mxu1 %v2797_v26 }
 0x10d   :  { %2799 = vmatprep.subr.bf16.mxu1 %v3900_v6 }
 0x10e   :  { %v2800_v31 = vpack.c.bf16 %v705_v28, %v704_v30  ;;  %v2593_v32 = vpop.f32.mrb[16].mxu0  ;;  %v767_v28 = vld [vmem:[#allocation3 + $0x68] sm:$0xff] }
 0x10f   :  { %v707_v33 = vmax.f32 %v2593_v32, 0.0  ;;  %v451_v34 = vpop.f32.mrb[17].mxu0 }
 0x110   :  { %v706_v35 = vmax.f32 %v451_v34, 0.0  ;;  %2801 = vmatpush1.bf16.msra.mxu1 %v2800_v31  ;;  %v766_v34 = vld [vmem:[#allocation3 + $0x60] sm:$0xff] }
 0x111   :  { %2802 = vmatprep.subr.bf16.mxu1 %v3900_v6 }
 0x112   :  { %v2803_v36 = vpack.c.bf16 %v707_v33, %v706_v35  ;;  %v2596_v37 = vpop.f32.mrb[18].mxu0  ;;  %v771_v35 = vld [vmem:[#allocation3 + $0x88] sm:$0xff] }
 0x113   :  { %v709_v38 = vmax.f32 %v2596_v37, 0.0  ;;  %v461_v39 = vpop.f32.mrb[19].mxu0 }
 0x114   :  { %v708_v40 = vmax.f32 %v461_v39, 0.0  ;;  %2804 = vmatpush1.bf16.msra.mxu1 %v2803_v36 }
 0x115   :  { %2805 = vmatprep.subr.bf16.mxu1 %v3900_v6 }
 0x116   :  { %v2806_v41 = vpack.c.bf16 %v709_v38, %v708_v40  ;;  %v2599_v42 = vpop.f32.mrb[20].mxu0 }
 0x117   :  { %v711_v43 = vmax.f32 %v2599_v42, 0.0  ;;  %v471_v44 = vpop.f32.mrb[21].mxu0  ;;  %v775_v42 = vld [vmem:[#allocation3 + $0xa8] sm:$0xff] }
 0x118   :  { %v710_v45 = vmax.f32 %v471_v44, 0.0  ;;  %2807 = vmatpush1.bf16.msra.mxu1 %v2806_v41  ;;  %v770_v41 = vld [vmem:[#allocation3 + $0x80] sm:$0xff] }
 0x119   :  { %2808 = vmatprep.subr.bf16.mxu1 %v3900_v6 }
 0x11a   :  { %v2809_v46 = vpack.c.bf16 %v711_v43, %v710_v45  ;;  %v2602_v47 = vpop.f32.mrb[22].mxu0 }
 0x11b   :  { %v713_v48 = vmax.f32 %v2602_v47, 0.0  ;;  %v481_v49 = vpop.f32.mrb[23].mxu0 }
 0x11c   :  { %v712_v50 = vmax.f32 %v481_v49, 0.0  ;;  %2810 = vmatpush1.bf16.msra.mxu1 %v2809_v46  ;;  %v779_v49 = vld [vmem:[#allocation3 + $0xc8] sm:$0xff] }
 0x11d   :  { %2811 = vmatprep.subr.bf16.mxu1 %v3900_v6 }
 0x11e   :  { %v2812_v51 = vpack.c.bf16 %v713_v48, %v712_v50  ;;  %v2605_v52 = vpop.f32.mrb[24].mxu0  ;;  %v774_v48 = vld [vmem:[#allocation3 + $0xa0] sm:$0xff] }
 0x11f   :  { %v715_v53 = vmax.f32 %v2605_v52, 0.0  ;;  %v491_v54 = vpop.f32.mrb[25].mxu0 }
 0x120   :  { %v714_v55 = vmax.f32 %v491_v54, 0.0  ;;  %2813 = vmatpush1.bf16.msra.mxu1 %v2812_v51 }
 0x121   :  { %2814 = vmatprep.subr.bf16.mxu1 %v3900_v6 }
 0x122   :  { %v2815_v56 = vpack.c.bf16 %v715_v53, %v714_v55  ;;  %v2608_v57 = vpop.f32.mrb[26].mxu0  ;;  %v778_v55 = vld [vmem:[#allocation3 + $0xc0] sm:$0xff] }
 0x123   :  { %v717_v58 = vmax.f32 %v2608_v57, 0.0  ;;  %v501_v59 = vpop.f32.mrb[27].mxu0 }
 0x124   :  { %v716_v60 = vmax.f32 %v501_v59, 0.0  ;;  %2816 = vmatpush1.bf16.msra.mxu1 %v2815_v56  ;;  %v783_v56 = vld [vmem:[#allocation3 + $0xe8] sm:$0xff] }
 0x125   :  { %2817 = vmatprep.subr.bf16.mxu1 %v3900_v6 }
 0x126   :  { %v2818_v61 = vpack.c.bf16 %v717_v58, %v716_v60  ;;  %v2611_v62 = vpop.f32.mrb[28].mxu0 }
 0x127   :  { %v719_v63 = vmax.f32 %v2611_v62, 0.0  ;;  %v511_v0 = vpop.f32.mrb[29].mxu0  ;;  %v782_v62 = vld [vmem:[#allocation3 + $0xe0] sm:$0xff] }
 0x128   :  { %v718_v1 = vmax.f32 %v511_v0, 0.0  ;;  %2819 = vmatpush1.bf16.msra.mxu1 %v2818_v61 }
 0x129   :  { %2820 = vmatprep.subr.bf16.mxu1 %v3900_v6 }
 0x12a   :  { %v2821_v2 = vpack.c.bf16 %v719_v63, %v718_v1  ;;  %v2614_v3 = vpop.f32.mrb[30].mxu0  ;;  %v787_v63 = vld [vmem:[#allocation3 + $0x108] sm:$0xff] }
 0x12b   :  { %v721_v4 = vmax.f32 %v2614_v3, 0.0  ;;  %v521_v5 = vpop.f32.mrb[31].mxu0 }
 0x12c   :  { %v720_v7 = vmax.f32 %v521_v5, 0.0  ;;  %2822 = vmatpush1.bf16.msra.mxu1 %v2821_v2  ;;  %v786_v5 = vld [vmem:[#allocation3 + $0x100] sm:$0xff] }
 0x12d   :  { %2823 = vmatprep.subr.bf16.mxu1 %v3900_v6 }
 0x12e   :  { %v2824_v8 = vpack.c.bf16 %v721_v4, %v720_v7  ;;  %v2617_v9 = vpop.f32.mrb[32].mxu0  ;;  %v791_v7 = vld [vmem:[#allocation3 + $0x128] sm:$0xff] }
 0x12f   :  { %v723_v10 = vmax.f32 %v2617_v9, 0.0  ;;  %v531_v11 = vpop.f32.mrb[33].mxu0 }
 0x130   :  { %v722_v12 = vmax.f32 %v531_v11, 0.0  ;;  %2825 = vmatpush1.bf16.msra.mxu1 %v2824_v8 }
 0x132   :  { %v2827_v15 = vpack.c.bf16 %v723_v10, %v722_v12  ;;  %v2620_v16 = vpop.f32.mrb[34].mxu0  ;;  %v3531_v12 = vpop.f32.mrb[0].mxu1 }
 0x133   :  { %v725_v17 = vmax.f32 %v2620_v16, 0.0  ;;  %v541_v18 = vpop.f32.mrb[35].mxu0  ;;  %1513 = vmatmul.mubr.f32.vlgmr.msra.gmra.mrb[48].mxu1 %v754_v13  ;;  %v795_v16 = vld [vmem:[#allocation3 + $0x148] sm:$0xff] }
 0x134   :  { %v724_v19 = vmax.f32 %v541_v18, 0.0  ;;  %2828 = vmatpush1.bf16.msra.mxu0 %v2827_v15  ;;  %1517 = vmatprep.mubr.f32.mxu1 %v759_v14  ;;  %v790_v14 = vld [vmem:[#allocation3 + $0x120] sm:$0xff]  ;;  %v3533_v15 = vpop.f32.mrb[1].mxu1 }
 0x135   :  { %2829 = vmatprep.subr.bf16.mxu0 %v3900_v6 }
 0x136   :  { %v2830_v22 = vpack.c.bf16 %v725_v17, %v724_v19  ;;  %v2623_v23 = vpop.f32.mrb[36].mxu0 }
 0x137   :  { %v727_v24 = vmax.f32 %v2623_v23, 0.0  ;;  %v551_v25 = vpop.f32.mrb[37].mxu0  ;;  %1518 = vmatmul.mubr.f32.gmra.mrb[50].mxu1 %v758_v20  ;;  %v794_v23 = vld [vmem:[#allocation3 + $0x140] sm:$0xff] }
 0x138   :  { %v726_v26 = vmax.f32 %v551_v25, 0.0  ;;  %2831 = vmatpush1.bf16.msra.mxu0 %v2830_v22  ;;  %1522 = vmatprep.mubr.f32.mxu1 %v763_v21  ;;  %v3536_v21 = vpop.f32.mrb[2].mxu1  ;;  %v799_v25 = vld [vmem:[#allocation3 + $0x168] sm:$0xff] }
 0x139   :  { %2832 = vmatprep.subr.bf16.mxu0 %v3900_v6 }
 0x13a   :  { %v2833_v29 = vpack.c.bf16 %v727_v24, %v726_v26  ;;  %v2626_v30 = vpop.f32.mrb[38].mxu0  ;;  %v3538_v24 = vpop.f32.mrb[3].mxu1 }
 0x13b   :  { %v729_v31 = vmax.f32 %v2626_v30, 0.0  ;;  %v561_v32 = vpop.f32.mrb[39].mxu0  ;;  %1523 = vmatmul.mubr.f32.gmra.mrb[52].mxu1 %v762_v27  ;;  %v3541_v26 = vpop.f32.mrb[4].mxu1 }
 0x13c   :  { %v728_v33 = vmax.f32 %v561_v32, 0.0  ;;  %2834 = vmatpush1.bf16.msra.mxu0 %v2833_v29  ;;  %1527 = vmatprep.mubr.f32.mxu1 %v767_v28  ;;  %v3543_v29 = vpop.f32.mrb[5].mxu1 }
 0x13d   :  { %2835 = vmatprep.subr.bf16.mxu0 %v3900_v6  ;;  %v3545_v32 = vpop.f32.mrb[6].mxu1 }
 0x13e   :  { %v2836_v36 = vpack.c.bf16 %v729_v31, %v728_v33  ;;  %v2629_v37 = vpop.f32.mrb[40].mxu0 }
 0x13f   :  { %v731_v38 = vmax.f32 %v2629_v37, 0.0  ;;  %v571_v39 = vpop.f32.mrb[41].mxu0  ;;  %1528 = vmatmul.mubr.f32.gmra.mrb[54].mxu1 %v766_v34  ;;  %v798_v34 = vld [vmem:[#allocation3 + $0x160] sm:$0xff] }
 0x140   :  { %v730_v40 = vmax.f32 %v571_v39, 0.0  ;;  %2837 = vmatpush1.bf16.msra.mxu0 %v2836_v36  ;;  %1532 = vmatprep.mubr.f32.mxu1 %v771_v35  ;;  %v3547_v35 = vpop.f32.mrb[7].mxu1  ;;  %v803_v36 = vld [vmem:[#allocation3 + $0x188] sm:$0xff] }
 0x141   :  { %2838 = vmatprep.subr.bf16.mxu0 %v3900_v6  ;;  %v3550_v37 = vpop.f32.mrb[8].mxu1 }
 0x142   :  { %v2839_v43 = vpack.c.bf16 %v731_v38, %v730_v40  ;;  %v2632_v44 = vpop.f32.mrb[42].mxu0  ;;  %v3552_v40 = vpop.f32.mrb[9].mxu1 }
 0x143   :  { %v733_v45 = vmax.f32 %v2632_v44, 0.0  ;;  %v581_v46 = vpop.f32.mrb[43].mxu0  ;;  %1533 = vmatmul.mubr.f32.gmra.mrb[56].mxu1 %v770_v41 }
 0x144   :  { %v732_v47 = vmax.f32 %v581_v46, 0.0  ;;  %2840 = vmatpush1.bf16.msra.mxu0 %v2839_v43  ;;  %1537 = vmatprep.mubr.f32.mxu1 %v775_v42  ;;  %v3554_v43 = vpop.f32.mrb[10].mxu1 }
 0x145   :  { %2841 = vmatprep.subr.bf16.mxu0 %v3900_v6  ;;  %v3556_v46 = vpop.f32.mrb[11].mxu1 }
 0x146   :  { %v2842_v50 = vpack.c.bf16 %v733_v45, %v732_v47  ;;  %v2635_v51 = vpop.f32.mrb[44].mxu0  ;;  %v802_v45 = vld [vmem:[#allocation3 + $0x180] sm:$0xff]  ;;  %v807_v47 = vld [vmem:[#allocation3 + $0x1a8] sm:$0xff] }
 0x147   :  { %v735_v52 = vmax.f32 %v2635_v51, 0.0  ;;  %v591_v53 = vpop.f32.mrb[45].mxu0  ;;  %1538 = vmatmul.mubr.f32.gmra.mrb[58].mxu1 %v774_v48  ;;  %v3559_v48 = vpop.f32.mrb[12].mxu1 }
 0x148   :  { %v734_v54 = vmax.f32 %v591_v53, 0.0  ;;  %2843 = vmatpush1.bf16.msra.mxu0 %v2842_v50  ;;  %1542 = vmatprep.mubr.f32.mxu1 %v779_v49  ;;  %v3561_v51 = vpop.f32.mrb[13].mxu1 }
 0x149   :  { %2844 = vmatprep.subr.bf16.mxu0 %v3900_v6 }
 0x14a   :  { %v2845_v57 = vpack.c.bf16 %v735_v52, %v734_v54  ;;  %v2638_v58 = vpop.f32.mrb[46].mxu0  ;;  %v3563_v54 = vpop.f32.mrb[14].mxu1 }
 0x14b   :  { %v737_v59 = vmax.f32 %v2638_v58, 0.0  ;;  %v601_v60 = vpop.f32.mrb[47].mxu0  ;;  %1543 = vmatmul.mubr.f32.gmra.mrb[60].mxu1 %v778_v55  ;;  %v811_v58 = vld [vmem:[#allocation3 + $0x1c8] sm:$0xff] }
 0x14c   :  { %v736_v61 = vmax.f32 %v601_v60, 0.0  ;;  %2846 = vmatpush1.bf16.msra.mxu0 %v2845_v57  ;;  %1547 = vmatprep.mubr.f32.mxu1 %v783_v56  ;;  %v806_v56 = vld [vmem:[#allocation3 + $0x1a0] sm:$0xff]  ;;  %v3565_v57 = vpop.f32.mrb[15].mxu1 }
 0x14d   :  { %2847 = vmatprep.subr.bf16.mxu0 %v3900_v6 }
 0x14e   :  { %v2848_v0 = vpack.c.bf16 %v737_v59, %v736_v61  ;;  %v2641_v1 = vpop.f32.mrb[48].mxu0  ;;  %v3568_v59 = vpop.f32.mrb[16].mxu1 }
 0x14f   :  { %v739_v2 = vmax.f32 %v2641_v1, 0.0  ;;  %v611_v3 = vpop.f32.mrb[49].mxu0  ;;  %1548 = vmatmul.mubr.f32.gmra.mrb[62].mxu1 %v782_v62  ;;  %v3570_v62 = vpop.f32.mrb[17].mxu1 }
 0x150   :  { %v738_v4 = vmax.f32 %v611_v3, 0.0  ;;  %2849 = vmatpush1.bf16.msra.mxu0 %v2848_v0  ;;  %1552 = vmatprep.mubr.f32.mxu1 %v787_v63  ;;  %v3572_v1 = vpop.f32.mrb[18].mxu1  ;;  %v810_v3 = vld [vmem:[#allocation3 + $0x1c0] sm:$0xff] }
 0x151   :  { %2850 = vmatprep.subr.bf16.mxu0 %v3900_v6 }
 0x152   :  { %v2851_v8 = vpack.c.bf16 %v739_v2, %v738_v4  ;;  %v2644_v9 = vpop.f32.mrb[50].mxu0  ;;  %v3574_v4 = vpop.f32.mrb[19].mxu1 }
 0x153   :  { %v741_v10 = vmax.f32 %v2644_v9, 0.0  ;;  %v621_v11 = vpop.f32.mrb[51].mxu0  ;;  %1553 = vmatmul.mubr.f32.gmra.mrb[64].mxu1 %v786_v5  ;;  %v815_v5 = vld [vmem:[#allocation3 + $0x1e8] sm:$0xff] }
 0x154   :  { %v740_v13 = vmax.f32 %v621_v11, 0.0  ;;  %2852 = vmatpush1.bf16.msra.mxu0 %v2851_v8  ;;  %1557 = vmatprep.mubr.f32.mxu1 %v791_v7  ;;  %v3577_v7 = vpop.f32.mrb[20].mxu1 }
 0x155   :  { %2853 = vmatprep.subr.bf16.mxu0 %v3900_v6 }
 0x156   :  { %v2854_v17 = vpack.c.bf16 %v741_v10, %v740_v13  ;;  %v2647_v18 = vpop.f32.mrb[52].mxu0  ;;  %v3579_v10 = vpop.f32.mrb[21].mxu1 }
 0x157   :  { %v743_v19 = vmax.f32 %v2647_v18, 0.0  ;;  %v631_v20 = vpop.f32.mrb[53].mxu0  ;;  %1558 = vmatmul.mubr.f32.gmra.mrb[66].mxu1 %v790_v14  ;;  %v3581_v14 = vpop.f32.mrb[22].mxu1 }
 0x158   :  { %v742_v22 = vmax.f32 %v631_v20, 0.0  ;;  %2855 = vmatpush1.bf16.msra.mxu0 %v2854_v17  ;;  %1562 = vmatprep.mubr.f32.mxu1 %v795_v16  ;;  %v814_v17 = vld [vmem:[#allocation3 + $0x1e0] sm:$0xff]  ;;  %v3583_v18 = vpop.f32.mrb[23].mxu1 }
 0x159   :  { %2856 = vmatprep.subr.bf16.mxu0 %v3900_v6  ;;  %v3586_v20 = vpop.f32.mrb[24].mxu1 }
 0x15a   :  { %v2857_v27 = vpack.c.bf16 %v743_v19, %v742_v22  ;;  %v2650_v28 = vpop.f32.mrb[54].mxu0  ;;  %v819_v19 = vld [vmem:[#allocation3 + $0x208] sm:$0xff] }
 0x15b   :  { %v745_v30 = vmax.f32 %v2650_v28, 0.0  ;;  %v641_v31 = vpop.f32.mrb[55].mxu0  ;;  %1563 = vmatmul.mubr.f32.gmra.mrb[68].mxu1 %v794_v23  ;;  %v3588_v23 = vpop.f32.mrb[25].mxu1  ;;  %v756_v28 = vld [vmem:[#allocation3 + $0x10] sm:$0xff] }
 0x15c   :  { %v744_v33 = vmax.f32 %v641_v31, 0.0  ;;  %2858 = vmatpush1.bf16.msra.mxu0 %v2857_v27  ;;  %1567 = vmatprep.mubr.f32.mxu1 %v799_v25  ;;  %v3590_v25 = vpop.f32.mrb[26].mxu1  ;;  %v818_v27 = vld [vmem:[#allocation3 + $0x200] sm:$0xff]  ;;  %v823_v31 = vld [vmem:[#allocation3 + $0x228] sm:$0xff] }
 0x15d   :  { %2859 = vmatprep.subr.bf16.mxu0 %v3900_v6 }
 0x15e   :  { %v2860_v38 = vpack.c.bf16 %v745_v30, %v744_v33  ;;  %v2653_v39 = vpop.f32.mrb[56].mxu0  ;;  %v3592_v30 = vpop.f32.mrb[27].mxu1  ;;  %v761_v33 = vld [vmem:[#allocation3 + $0x38] sm:$0xff] }
 0x15f   :  { %v747_v41 = vmax.f32 %v2653_v39, 0.0  ;;  %v651_v42 = vpop.f32.mrb[57].mxu0  ;;  %1568 = vmatmul.mubr.f32.gmra.mrb[70].mxu1 %v798_v34  ;;  %v3594_v34 = vpop.f32.mrb[28].mxu1  ;;  %v822_v39 = vld [vmem:[#allocation3 + $0x220] sm:$0xff] }
 0x160   :  { %v746_v44 = vmax.f32 %v651_v42, 0.0  ;;  %2861 = vmatpush1.bf16.msra.mxu0 %v2860_v38  ;;  %1572 = vmatprep.mubr.f32.mxu1 %v803_v36  ;;  %v3596_v36 = vpop.f32.mrb[29].mxu1 }
 0x161   :  { %2862 = vmatprep.subr.bf16.mxu0 %v3900_v6  ;;  %v3598_v38 = vpop.f32.mrb[30].mxu1 }
 0x162   :  { %v2863_v49 = vpack.c.bf16 %v747_v41, %v746_v44  ;;  %v2656_v50 = vpop.f32.mrb[58].mxu0  ;;  %v760_v41 = vld [vmem:[#allocation3 + $0x30] sm:$0xff]  ;;  %v3600_v42 = vpop.f32.mrb[31].mxu1  ;;  %v827_v44 = vld [vmem:[#allocation3 + $0x248] sm:$0xff] }
 0x163   :  { %v749_v52 = vmax.f32 %v2656_v50, 0.0  ;;  %v661_v53 = vpop.f32.mrb[59].mxu0  ;;  %1573 = vmatmul.mubr.f32.gmra.mrb[72].mxu1 %v802_v45  ;;  %v765_v45 = vld [vmem:[#allocation3 + $0x58] sm:$0xff] }
 0x164   :  { %v748_v55 = vmax.f32 %v661_v53, 0.0  ;;  %2864 = vmatpush1.bf16.msra.mxu0 %v2863_v49  ;;  %1577 = vmatprep.mubr.f32.mxu1 %v807_v47  ;;  %v3602_v47 = vpop.f32.mrb[32].mxu1  ;;  %v764_v53 = vld [vmem:[#allocation3 + $0x50] sm:$0xff] }
 0x165   :  { %2865 = vmatprep.subr.bf16.mxu0 %v3900_v6  ;;  %v3604_v49 = vpop.f32.mrb[33].mxu1 }
 0x166   :  { %v2866_v60 = vpack.c.bf16 %v749_v52, %v748_v55  ;;  %v2659_v61 = vpop.f32.mrb[60].mxu0  ;;  %v3606_v50 = vpop.f32.mrb[34].mxu1  ;;  %v826_v52 = vld [vmem:[#allocation3 + $0x240] sm:$0xff] }
 0x167   :  { %v751_v63 = vmax.f32 %v2659_v61, 0.0  ;;  %v671_v0 = vpop.f32.mrb[61].mxu0  ;;  %1578 = vmatmul.mubr.f32.gmra.mrb[74].mxu1 %v806_v56  ;;  %v3608_v55 = vpop.f32.mrb[35].mxu1  ;;  %v831_v56 = vld [vmem:[#allocation3 + $0x268] sm:$0xff] }
 0x168   :  { %v750_v2 = vmax.f32 %v671_v0, 0.0  ;;  %2867 = vmatpush1.bf16.msra.mxu0 %v2866_v60  ;;  %1582 = vmatprep.mubr.f32.mxu1 %v811_v58  ;;  %v769_v58 = vld [vmem:[#allocation3 + $0x78] sm:$0xff]  ;;  %v3610_v60 = vpop.f32.mrb[36].mxu1  ;;  %v830_v0 = vld [vmem:[#allocation3 + $0x260] sm:$0xff] }
 0x169   :  { %2868 = vmatprep.subr.bf16.mxu0 %v3900_v6  ;;  %v3612_v61 = vpop.f32.mrb[37].mxu1 }
 0x16a   :  { %v2869_v8 = vpack.c.bf16 %v751_v63, %v750_v2  ;;  %v2662_v9 = vpop.f32.mrb[62].mxu0  ;;  %v3614_v63 = vpop.f32.mrb[38].mxu1  ;;  %v768_v2 = vld [vmem:[#allocation3 + $0x70] sm:$0xff] }
 0x16b   :  { %v753_v11 = vmax.f32 %v2662_v9, 0.0  ;;  %v681_v13 = vpop.f32.mrb[63].mxu0  ;;  %1583 = vmatmul.mubr.f32.gmra.mrb[76].mxu1 %v810_v3  ;;  %v3616_v3 = vpop.f32.mrb[39].mxu1 }
 0x16c   :  { %v752_v16 = vmax.f32 %v681_v13, 0.0  ;;  %2870 = vmatpush1.bf16.msra.mxu0 %v2869_v8  ;;  %1587 = vmatprep.mubr.f32.mxu1 %v815_v5  ;;  %v835_v5 = vld [vmem:[#allocation3 + $0x288] sm:$0xff]  ;;  %v773_v8 = vld [vmem:[#allocation3 + $0x98] sm:$0xff]  ;;  %v3618_v9 = vpop.f32.mrb[40].mxu1 }
 0x16d   :  { %2871 = vmatprep.subr.bf16.mxu0 %v3900_v6 }
 0x16e   :  { %v2872_v22 = vpack.c.bf16 %v753_v11, %v752_v16  ;;  %v3620_v11 = vpop.f32.mrb[41].mxu1  ;;  %v834_v16 = vld [vmem:[#allocation3 + $0x280] sm:$0xff] }
 0x16f   :  { %1588 = vmatmul.mubr.f32.gmra.mrb[78].mxu1 %v814_v17  ;;  %v3622_v13 = vpop.f32.mrb[42].mxu1  ;;  %v772_v17 = vld [vmem:[#allocation3 + $0x90] sm:$0xff] }
 0x170   :  { %2873 = vmatpush1.bf16.msra.mxu0 %v2872_v22  ;;  %1592 = vmatprep.mubr.f32.mxu1 %v819_v19  ;;  %v3624_v19 = vpop.f32.mrb[43].mxu1  ;;  %v839_v22 = vld [vmem:[#allocation3 + $0x2a8] sm:$0xff] }
 0x173   :  { %1593 = vmatmul.mubr.f32.gmra.mrb[80].mxu1 %v818_v27  ;;  %1818 = vmatmul.mubr.f32.vlgmr.msra.gmra.mrb[64].mxu0 %v756_v28  ;;  %v777_v27 = vld [vmem:[#allocation3 + $0xb8] sm:$0xff]  ;;  %v3626_v28 = vpop.f32.mrb[44].mxu1 }
 0x174   :  { %1597 = vmatprep.mubr.f32.mxu1 %v823_v31  ;;  %1822 = vmatprep.mubr.f32.mxu0 %v761_v33  ;;  %v3628_v31 = vpop.f32.mrb[45].mxu1 }
 0x175   :  { %v3630_v33 = vpop.f32.mrb[46].mxu1 }
 0x176   :  { %3902 = vst [vmem:[#allocation9_spill] sm:$0xff] %v3630_v33 }
 0x177   :  { %1598 = vmatmul.mubr.f32.gmra.mrb[82].mxu1 %v822_v39  ;;  %1823 = vmatmul.mubr.f32.gmra.mrb[66].mxu0 %v760_v41  ;;  %v838_v39 = vld [vmem:[#allocation3 + $0x2a0] sm:$0xff]  ;;  %v776_v41 = vld [vmem:[#allocation3 + $0xb0] sm:$0xff] }
 0x178   :  { %1602 = vmatprep.mubr.f32.mxu1 %v827_v44  ;;  %1827 = vmatprep.mubr.f32.mxu0 %v765_v45  ;;  %v3632_v44 = vpop.f32.mrb[47].mxu1  ;;  %v843_v45 = vld [vmem:[#allocation3 + $0x2c8] sm:$0xff] }
 0x179   :  { %3903 = vst [vmem:[#allocation10_spill] sm:$0xff] %v3632_v44 }
 0x17b   :  { %1603 = vmatmul.mubr.f32.gmra.mrb[84].mxu1 %v826_v52  ;;  %1828 = vmatmul.mubr.f32.gmra.mrb[68].mxu0 %v764_v53  ;;  %v781_v52 = vld [vmem:[#allocation3 + $0xd8] sm:$0xff]  ;;  %v842_v53 = vld [vmem:[#allocation3 + $0x2c0] sm:$0xff] }
 0x17c   :  { %1607 = vmatprep.mubr.f32.mxu1 %v831_v56  ;;  %1832 = vmatprep.mubr.f32.mxu0 %v769_v58  ;;  %v780_v56 = vld [vmem:[#allocation3 + $0xd0] sm:$0xff]  ;;  %v847_v58 = vld [vmem:[#allocation3 + $0x2e8] sm:$0xff] }
 0x17f   :  { %1608 = vmatmul.mubr.f32.gmra.mrb[86].mxu1 %v830_v0  ;;  %1833 = vmatmul.mubr.f32.gmra.mrb[70].mxu0 %v768_v2  ;;  %v785_v0 = vld [vmem:[#allocation3 + $0xf8] sm:$0xff]  ;;  %v846_v2 = vld [vmem:[#allocation3 + $0x2e0] sm:$0xff] }
 0x180   :  { %1612 = vmatprep.mubr.f32.mxu1 %v835_v5  ;;  %1837 = vmatprep.mubr.f32.mxu0 %v773_v8  ;;  %v784_v5 = vld [vmem:[#allocation3 + $0xf0] sm:$0xff]  ;;  %v851_v8 = vld [vmem:[#allocation3 + $0x308] sm:$0xff] }
 0x183   :  { %1613 = vmatmul.mubr.f32.gmra.mrb[88].mxu1 %v834_v16  ;;  %1838 = vmatmul.mubr.f32.gmra.mrb[72].mxu0 %v772_v17  ;;  %v789_v16 = vld [vmem:[#allocation3 + $0x118] sm:$0xff]  ;;  %v850_v17 = vld [vmem:[#allocation3 + $0x300] sm:$0xff] }
 0x184   :  { %1617 = vmatprep.mubr.f32.mxu1 %v839_v22  ;;  %1842 = vmatprep.mubr.f32.mxu0 %v777_v27  ;;  %v788_v22 = vld [vmem:[#allocation3 + $0x110] sm:$0xff]  ;;  %v855_v27 = vld [vmem:[#allocation3 + $0x328] sm:$0xff] }
 0x187   :  { %1618 = vmatmul.mubr.f32.gmra.mrb[90].mxu1 %v838_v39  ;;  %1843 = vmatmul.mubr.f32.gmra.mrb[74].mxu0 %v776_v41  ;;  %v793_v39 = vld [vmem:[#allocation3 + $0x138] sm:$0xff]  ;;  %v854_v41 = vld [vmem:[#allocation3 + $0x320] sm:$0xff] }
 0x188   :  { %1622 = vmatprep.mubr.f32.mxu1 %v843_v45  ;;  %1847 = vmatprep.mubr.f32.mxu0 %v781_v52  ;;  %v792_v45 = vld [vmem:[#allocation3 + $0x130] sm:$0xff]  ;;  %v859_v52 = vld [vmem:[#allocation3 + $0x348] sm:$0xff] }
 0x18b   :  { %1623 = vmatmul.mubr.f32.gmra.mrb[92].mxu1 %v842_v53  ;;  %1848 = vmatmul.mubr.f32.gmra.mrb[76].mxu0 %v780_v56  ;;  %v797_v53 = vld [vmem:[#allocation3 + $0x158] sm:$0xff]  ;;  %v858_v56 = vld [vmem:[#allocation3 + $0x340] sm:$0xff] }
 0x18c   :  { %1627 = vmatprep.mubr.f32.mxu1 %v847_v58  ;;  %1852 = vmatprep.mubr.f32.mxu0 %v785_v0  ;;  %v796_v58 = vld [vmem:[#allocation3 + $0x150] sm:$0xff]  ;;  %v863_v0 = vld [vmem:[#allocation3 + $0x368] sm:$0xff] }
 0x18f   :  { %1628 = vmatmul.mubr.f32.gmra.mrb[94].mxu1 %v846_v2  ;;  %1853 = vmatmul.mubr.f32.gmra.mrb[78].mxu0 %v784_v5  ;;  %v801_v2 = vld [vmem:[#allocation3 + $0x178] sm:$0xff]  ;;  %v862_v5 = vld [vmem:[#allocation3 + $0x360] sm:$0xff] }
 0x190   :  { %1632 = vmatprep.mubr.f32.mxu1 %v851_v8  ;;  %1857 = vmatprep.mubr.f32.mxu0 %v789_v16  ;;  %v800_v8 = vld [vmem:[#allocation3 + $0x170] sm:$0xff]  ;;  %v867_v16 = vld [vmem:[#allocation3 + $0x388] sm:$0xff] }
 0x193   :  { %1633 = vmatmul.mubr.f32.gmra.mrb[96].mxu1 %v850_v17  ;;  %1858 = vmatmul.mubr.f32.gmra.mrb[80].mxu0 %v788_v22  ;;  %v805_v17 = vld [vmem:[#allocation3 + $0x198] sm:$0xff]  ;;  %v866_v22 = vld [vmem:[#allocation3 + $0x380] sm:$0xff] }
 0x194   :  { %1637 = vmatprep.mubr.f32.mxu1 %v855_v27  ;;  %1862 = vmatprep.mubr.f32.mxu0 %v793_v39  ;;  %v804_v27 = vld [vmem:[#allocation3 + $0x190] sm:$0xff]  ;;  %v871_v39 = vld [vmem:[#allocation3 + $0x3a8] sm:$0xff] }
 0x197   :  { %1638 = vmatmul.mubr.f32.gmra.mrb[98].mxu1 %v854_v41  ;;  %1863 = vmatmul.mubr.f32.gmra.mrb[82].mxu0 %v792_v45  ;;  %v809_v41 = vld [vmem:[#allocation3 + $0x1b8] sm:$0xff]  ;;  %v870_v45 = vld [vmem:[#allocation3 + $0x3a0] sm:$0xff] }
 0x198   :  { %1642 = vmatprep.mubr.f32.mxu1 %v859_v52  ;;  %1867 = vmatprep.mubr.f32.mxu0 %v797_v53  ;;  %v808_v52 = vld [vmem:[#allocation3 + $0x1b0] sm:$0xff]  ;;  %v875_v53 = vld [vmem:[#allocation3 + $0x3c8] sm:$0xff] }
 0x19b   :  { %1643 = vmatmul.mubr.f32.gmra.mrb[100].mxu1 %v858_v56  ;;  %1868 = vmatmul.mubr.f32.gmra.mrb[84].mxu0 %v796_v58  ;;  %v813_v56 = vld [vmem:[#allocation3 + $0x1d8] sm:$0xff]  ;;  %v874_v58 = vld [vmem:[#allocation3 + $0x3c0] sm:$0xff] }
 0x19c   :  { %1647 = vmatprep.mubr.f32.mxu1 %v863_v0  ;;  %1872 = vmatprep.mubr.f32.mxu0 %v801_v2  ;;  %v812_v0 = vld [vmem:[#allocation3 + $0x1d0] sm:$0xff]  ;;  %v879_v2 = vld [vmem:[#allocation3 + $0x3e8] sm:$0xff] }
 0x19f   :  { %1648 = vmatmul.mubr.f32.gmra.mrb[102].mxu1 %v862_v5  ;;  %1873 = vmatmul.mubr.f32.gmra.mrb[86].mxu0 %v800_v8  ;;  %v817_v5 = vld [vmem:[#allocation3 + $0x1f8] sm:$0xff]  ;;  %v878_v8 = vld [vmem:[#allocation3 + $0x3e0] sm:$0xff] }
 0x1a0   :  { %1652 = vmatprep.mubr.f32.mxu1 %v867_v16  ;;  %1877 = vmatprep.mubr.f32.mxu0 %v805_v17  ;;  %v816_v16 = vld [vmem:[#allocation3 + $0x1f0] sm:$0xff]  ;;  %v883_v17 = vld [vmem:[#allocation3 + $0x408] sm:$0xff] }
 0x1a3   :  { %1653 = vmatmul.mubr.f32.gmra.mrb[104].mxu1 %v866_v22  ;;  %1878 = vmatmul.mubr.f32.gmra.mrb[88].mxu0 %v804_v27  ;;  %v821_v22 = vld [vmem:[#allocation3 + $0x218] sm:$0xff]  ;;  %v882_v27 = vld [vmem:[#allocation3 + $0x400] sm:$0xff] }
 0x1a4   :  { %1657 = vmatprep.mubr.f32.mxu1 %v871_v39  ;;  %1882 = vmatprep.mubr.f32.mxu0 %v809_v41  ;;  %v820_v39 = vld [vmem:[#allocation3 + $0x210] sm:$0xff]  ;;  %v887_v41 = vld [vmem:[#allocation3 + $0x428] sm:$0xff] }
 0x1a7   :  { %1658 = vmatmul.mubr.f32.gmra.mrb[106].mxu1 %v870_v45  ;;  %1883 = vmatmul.mubr.f32.gmra.mrb[90].mxu0 %v808_v52  ;;  %v825_v45 = vld [vmem:[#allocation3 + $0x238] sm:$0xff]  ;;  %v886_v52 = vld [vmem:[#allocation3 + $0x420] sm:$0xff] }
 0x1a8   :  { %1662 = vmatprep.mubr.f32.mxu1 %v875_v53  ;;  %1887 = vmatprep.mubr.f32.mxu0 %v813_v56  ;;  %v824_v53 = vld [vmem:[#allocation3 + $0x230] sm:$0xff]  ;;  %v891_v56 = vld [vmem:[#allocation3 + $0x448] sm:$0xff] }
 0x1ab   :  { %1663 = vmatmul.mubr.f32.gmra.mrb[108].mxu1 %v874_v58  ;;  %1888 = vmatmul.mubr.f32.gmra.mrb[92].mxu0 %v812_v0  ;;  %v829_v58 = vld [vmem:[#allocation3 + $0x258] sm:$0xff]  ;;  %v890_v0 = vld [vmem:[#allocation3 + $0x440] sm:$0xff] }
 0x1ac   :  { %1667 = vmatprep.mubr.f32.mxu1 %v879_v2  ;;  %1892 = vmatprep.mubr.f32.mxu0 %v817_v5  ;;  %v828_v2 = vld [vmem:[#allocation3 + $0x250] sm:$0xff]  ;;  %v895_v5 = vld [vmem:[#allocation3 + $0x468] sm:$0xff] }
 0x1af   :  { %1668 = vmatmul.mubr.f32.gmra.mrb[110].mxu1 %v878_v8  ;;  %1893 = vmatmul.mubr.f32.gmra.mrb[94].mxu0 %v816_v16  ;;  %v833_v8 = vld [vmem:[#allocation3 + $0x278] sm:$0xff]  ;;  %v894_v16 = vld [vmem:[#allocation3 + $0x460] sm:$0xff] }
 0x1b0   :  { %1672 = vmatprep.mubr.f32.mxu1 %v883_v17  ;;  %1897 = vmatprep.mubr.f32.mxu0 %v821_v22  ;;  %v832_v17 = vld [vmem:[#allocation3 + $0x270] sm:$0xff]  ;;  %v899_v22 = vld [vmem:[#allocation3 + $0x488] sm:$0xff] }
 0x1b3   :  { %1673 = vmatmul.mubr.f32.gmra.mrb[112].mxu1 %v882_v27  ;;  %1898 = vmatmul.mubr.f32.gmra.mrb[96].mxu0 %v820_v39  ;;  %v837_v27 = vld [vmem:[#allocation3 + $0x298] sm:$0xff]  ;;  %v898_v39 = vld [vmem:[#allocation3 + $0x480] sm:$0xff] }
 0x1b4   :  { %1677 = vmatprep.mubr.f32.mxu1 %v887_v41  ;;  %1902 = vmatprep.mubr.f32.mxu0 %v825_v45  ;;  %v836_v41 = vld [vmem:[#allocation3 + $0x290] sm:$0xff]  ;;  %v903_v45 = vld [vmem:[#allocation3 + $0x4a8] sm:$0xff] }
 0x1b7   :  { %1678 = vmatmul.mubr.f32.gmra.mrb[114].mxu1 %v886_v52  ;;  %1903 = vmatmul.mubr.f32.gmra.mrb[98].mxu0 %v824_v53  ;;  %v841_v52 = vld [vmem:[#allocation3 + $0x2b8] sm:$0xff]  ;;  %v902_v53 = vld [vmem:[#allocation3 + $0x4a0] sm:$0xff] }
 0x1b8   :  { %1682 = vmatprep.mubr.f32.mxu1 %v891_v56  ;;  %1907 = vmatprep.mubr.f32.mxu0 %v829_v58  ;;  %v840_v56 = vld [vmem:[#allocation3 + $0x2b0] sm:$0xff]  ;;  %v907_v58 = vld [vmem:[#allocation3 + $0x4c8] sm:$0xff] }
 0x1bb   :  { %1683 = vmatmul.mubr.f32.gmra.mrb[116].mxu1 %v890_v0  ;;  %1908 = vmatmul.mubr.f32.gmra.mrb[100].mxu0 %v828_v2  ;;  %v845_v0 = vld [vmem:[#allocation3 + $0x2d8] sm:$0xff]  ;;  %v906_v2 = vld [vmem:[#allocation3 + $0x4c0] sm:$0xff] }
 0x1bc   :  { %1687 = vmatprep.mubr.f32.mxu1 %v895_v5  ;;  %1912 = vmatprep.mubr.f32.mxu0 %v833_v8  ;;  %v844_v5 = vld [vmem:[#allocation3 + $0x2d0] sm:$0xff]  ;;  %v911_v8 = vld [vmem:[#allocation3 + $0x4e8] sm:$0xff] }
 0x1bf   :  { %1688 = vmatmul.mubr.f32.gmra.mrb[118].mxu1 %v894_v16  ;;  %1913 = vmatmul.mubr.f32.gmra.mrb[102].mxu0 %v832_v17  ;;  %v849_v16 = vld [vmem:[#allocation3 + $0x2f8] sm:$0xff]  ;;  %v910_v17 = vld [vmem:[#allocation3 + $0x4e0] sm:$0xff] }
 0x1c0   :  { %1692 = vmatprep.mubr.f32.mxu1 %v899_v22  ;;  %1917 = vmatprep.mubr.f32.mxu0 %v837_v27  ;;  %v848_v22 = vld [vmem:[#allocation3 + $0x2f0] sm:$0xff]  ;;  %v915_v27 = vld [vmem:[#allocation3 + $0x508] sm:$0xff] }
 0x1c3   :  { %1693 = vmatmul.mubr.f32.gmra.mrb[120].mxu1 %v898_v39  ;;  %1918 = vmatmul.mubr.f32.gmra.mrb[104].mxu0 %v836_v41  ;;  %v853_v39 = vld [vmem:[#allocation3 + $0x318] sm:$0xff]  ;;  %v914_v41 = vld [vmem:[#allocation3 + $0x500] sm:$0xff] }
 0x1c4   :  { %1697 = vmatprep.mubr.f32.mxu1 %v903_v45  ;;  %1922 = vmatprep.mubr.f32.mxu0 %v841_v52  ;;  %v852_v45 = vld [vmem:[#allocation3 + $0x310] sm:$0xff]  ;;  %v919_v52 = vld [vmem:[#allocation3 + $0x528] sm:$0xff] }
 0x1c7   :  { %1698 = vmatmul.mubr.f32.gmra.mrb[122].mxu1 %v902_v53  ;;  %1923 = vmatmul.mubr.f32.gmra.mrb[106].mxu0 %v840_v56  ;;  %v857_v53 = vld [vmem:[#allocation3 + $0x338] sm:$0xff]  ;;  %v918_v56 = vld [vmem:[#allocation3 + $0x520] sm:$0xff] }
 0x1c8   :  { %1702 = vmatprep.mubr.f32.mxu1 %v907_v58  ;;  %1927 = vmatprep.mubr.f32.mxu0 %v845_v0  ;;  %v856_v58 = vld [vmem:[#allocation3 + $0x330] sm:$0xff]  ;;  %v923_v0 = vld [vmem:[#allocation3 + $0x548] sm:$0xff] }
 0x1cb   :  { %1703 = vmatmul.mubr.f32.gmra.mrb[124].mxu1 %v906_v2  ;;  %1928 = vmatmul.mubr.f32.gmra.mrb[108].mxu0 %v844_v5  ;;  %v861_v2 = vld [vmem:[#allocation3 + $0x358] sm:$0xff]  ;;  %v922_v5 = vld [vmem:[#allocation3 + $0x540] sm:$0xff] }
 0x1cc   :  { %1707 = vmatprep.mubr.f32.mxu1 %v911_v8  ;;  %1932 = vmatprep.mubr.f32.mxu0 %v849_v16  ;;  %v860_v8 = vld [vmem:[#allocation3 + $0x350] sm:$0xff]  ;;  %v927_v16 = vld [vmem:[#allocation3 + $0x568] sm:$0xff] }
 0x1cf   :  { %1708 = vmatmul.mubr.f32.gmra.mrb[126].mxu1 %v910_v17  ;;  %1933 = vmatmul.mubr.f32.gmra.mrb[110].mxu0 %v848_v22  ;;  %v865_v17 = vld [vmem:[#allocation3 + $0x378] sm:$0xff]  ;;  %v926_v22 = vld [vmem:[#allocation3 + $0x560] sm:$0xff] }
 0x1d0   :  { %1712 = vmatprep.mubr.f32.mxu1 %v915_v27  ;;  %1937 = vmatprep.mubr.f32.mxu0 %v853_v39  ;;  %v864_v27 = vld [vmem:[#allocation3 + $0x370] sm:$0xff]  ;;  %v931_v39 = vld [vmem:[#allocation3 + $0x588] sm:$0xff] }
 0x1d3   :  { %1713 = vmatmul.mubr.f32.gmra.mrb[128].mxu1 %v914_v41  ;;  %1938 = vmatmul.mubr.f32.gmra.mrb[112].mxu0 %v852_v45  ;;  %v869_v41 = vld [vmem:[#allocation3 + $0x398] sm:$0xff]  ;;  %v930_v45 = vld [vmem:[#allocation3 + $0x580] sm:$0xff] }
 0x1d4   :  { %1717 = vmatprep.mubr.f32.mxu1 %v919_v52  ;;  %1942 = vmatprep.mubr.f32.mxu0 %v857_v53  ;;  %v868_v52 = vld [vmem:[#allocation3 + $0x390] sm:$0xff]  ;;  %v935_v53 = vld [vmem:[#allocation3 + $0x5a8] sm:$0xff] }
 0x1d7   :  { %1718 = vmatmul.mubr.f32.gmra.mrb[130].mxu1 %v918_v56  ;;  %1943 = vmatmul.mubr.f32.gmra.mrb[114].mxu0 %v856_v58  ;;  %v873_v56 = vld [vmem:[#allocation3 + $0x3b8] sm:$0xff]  ;;  %v934_v58 = vld [vmem:[#allocation3 + $0x5a0] sm:$0xff] }
 0x1d8   :  { %1722 = vmatprep.mubr.f32.mxu1 %v923_v0  ;;  %1947 = vmatprep.mubr.f32.mxu0 %v861_v2  ;;  %v872_v0 = vld [vmem:[#allocation3 + $0x3b0] sm:$0xff]  ;;  %v939_v2 = vld [vmem:[#allocation3 + $0x5c8] sm:$0xff] }
 0x1db   :  { %1723 = vmatmul.mubr.f32.gmra.mrb[132].mxu1 %v922_v5  ;;  %1948 = vmatmul.mubr.f32.gmra.mrb[116].mxu0 %v860_v8  ;;  %v877_v5 = vld [vmem:[#allocation3 + $0x3d8] sm:$0xff]  ;;  %v938_v8 = vld [vmem:[#allocation3 + $0x5c0] sm:$0xff] }
 0x1dc   :  { %1727 = vmatprep.mubr.f32.mxu1 %v927_v16  ;;  %1952 = vmatprep.mubr.f32.mxu0 %v865_v17  ;;  %v876_v16 = vld [vmem:[#allocation3 + $0x3d0] sm:$0xff]  ;;  %v943_v17 = vld [vmem:[#allocation3 + $0x5e8] sm:$0xff] }
 0x1df   :  { %1728 = vmatmul.mubr.f32.gmra.mrb[134].mxu1 %v926_v22  ;;  %1953 = vmatmul.mubr.f32.gmra.mrb[118].mxu0 %v864_v27  ;;  %v881_v22 = vld [vmem:[#allocation3 + $0x3f8] sm:$0xff]  ;;  %v942_v27 = vld [vmem:[#allocation3 + $0x5e0] sm:$0xff] }
 0x1e0   :  { %1732 = vmatprep.mubr.f32.mxu1 %v931_v39  ;;  %1957 = vmatprep.mubr.f32.mxu0 %v869_v41  ;;  %v880_v39 = vld [vmem:[#allocation3 + $0x3f0] sm:$0xff]  ;;  %v885_v41 = vld [vmem:[#allocation3 + $0x418] sm:$0xff] }
 0x1e3   :  { %1733 = vmatmul.mubr.f32.gmra.mrb[136].mxu1 %v930_v45  ;;  %1958 = vmatmul.mubr.f32.gmra.mrb[120].mxu0 %v868_v52  ;;  %v884_v45 = vld [vmem:[#allocation3 + $0x410] sm:$0xff]  ;;  %v889_v52 = vld [vmem:[#allocation3 + $0x438] sm:$0xff] }
 0x1e4   :  { %1737 = vmatprep.mubr.f32.mxu1 %v935_v53  ;;  %1962 = vmatprep.mubr.f32.mxu0 %v873_v56  ;;  %v888_v53 = vld [vmem:[#allocation3 + $0x430] sm:$0xff]  ;;  %v893_v56 = vld [vmem:[#allocation3 + $0x458] sm:$0xff] }
 0x1e7   :  { %1738 = vmatmul.mubr.f32.gmra.mrb[138].mxu1 %v934_v58  ;;  %1963 = vmatmul.mubr.f32.gmra.mrb[122].mxu0 %v872_v0  ;;  %v892_v58 = vld [vmem:[#allocation3 + $0x450] sm:$0xff]  ;;  %v897_v0 = vld [vmem:[#allocation3 + $0x478] sm:$0xff] }
 0x1e8   :  { %1742 = vmatprep.mubr.f32.mxu1 %v939_v2  ;;  %1967 = vmatprep.mubr.f32.mxu0 %v877_v5  ;;  %v896_v2 = vld [vmem:[#allocation3 + $0x470] sm:$0xff]  ;;  %v901_v5 = vld [vmem:[#allocation3 + $0x498] sm:$0xff] }
 0x1eb   :  { %1743 = vmatmul.mubr.f32.gmra.mrb[140].mxu1 %v938_v8  ;;  %1968 = vmatmul.mubr.f32.gmra.mrb[124].mxu0 %v876_v16  ;;  %v900_v8 = vld [vmem:[#allocation3 + $0x490] sm:$0xff]  ;;  %v905_v16 = vld [vmem:[#allocation3 + $0x4b8] sm:$0xff] }
 0x1ec   :  { %1747 = vmatprep.mubr.f32.mxu1 %v943_v17  ;;  %1972 = vmatprep.mubr.f32.mxu0 %v881_v22  ;;  %v904_v17 = vld [vmem:[#allocation3 + $0x4b0] sm:$0xff]  ;;  %v909_v22 = vld [vmem:[#allocation3 + $0x4d8] sm:$0xff] }
 0x1ef   :  { %1748 = vmatmul.mubr.f32.gmra.mrb[142].mxu1 %v942_v27  ;;  %1973 = vmatmul.mubr.f32.gmra.mrb[126].mxu0 %v880_v39 }
 0x1f0   :  { %1977 = vmatprep.mubr.f32.mxu0 %v885_v41 }
 0x1f3   :  { %1978 = vmatmul.mubr.f32.gmra.mrb[128].mxu0 %v884_v45  ;;  %v908_v45 = vld [vmem:[#allocation3 + $0x4d0] sm:$0xff] }
 0x1f4   :  { %1982 = vmatprep.mubr.f32.mxu0 %v889_v52  ;;  %v913_v52 = vld [vmem:[#allocation3 + $0x4f8] sm:$0xff] }
 0x1f7   :  { %1983 = vmatmul.mubr.f32.gmra.mrb[130].mxu0 %v888_v53 }
 0x1f8   :  { %1987 = vmatprep.mubr.f32.mxu0 %v893_v56 }
 0x1fb   :  { %1988 = vmatmul.mubr.f32.gmra.mrb[132].mxu0 %v892_v58 }
 0x1fc   :  { %1992 = vmatprep.mubr.f32.mxu0 %v897_v0  ;;  %v912_v0 = vld [vmem:[#allocation3 + $0x4f0] sm:$0xff] }
 0x1ff   :  { %1993 = vmatmul.mubr.f32.gmra.mrb[134].mxu0 %v896_v2  ;;  %v917_v2 = vld [vmem:[#allocation3 + $0x518] sm:$0xff] }
 0x200   :  { %1997 = vmatprep.mubr.f32.mxu0 %v901_v5 }
 0x203   :  { %1998 = vmatmul.mubr.f32.gmra.mrb[136].mxu0 %v900_v8 }
 0x204   :  { %2002 = vmatprep.mubr.f32.mxu0 %v905_v16  ;;  %v916_v16 = vld [vmem:[#allocation3 + $0x510] sm:$0xff] }
 0x206   :  { %v1514_v27 = vpop.f32.mrb[48].mxu1 }
 0x207   :  { %v3635_v39 = vadd.f32 %v1514_v27, %v3533_v15  ;;  %2003 = vmatmul.mubr.f32.gmra.mrb[138].mxu0 %v904_v17  ;;  %v1516_v41 = vpop.f32.mrb[49].mxu1  ;;  %v921_v17 = vld [vmem:[#allocation3 + $0x538] sm:$0xff] }
 0x208   :  { %2007 = vmatprep.mubr.f32.mxu0 %v909_v22  ;;  %v920_v41 = vld [vmem:[#allocation3 + $0x530] sm:$0xff] }
 0x20a   :  { %v1519_v53 = vpop.f32.mrb[50].mxu1 }
 0x20b   :  { %v3638_v56 = vadd.f32 %v3531_v12, %v1519_v53  ;;  %2008 = vmatmul.mubr.f32.gmra.mrb[140].mxu0 %v908_v45  ;;  %v1521_v58 = vpop.f32.mrb[51].mxu1  ;;  %v925_v45 = vld [vmem:[#allocation3 + $0x558] sm:$0xff] }
 0x20c   :  { %2012 = vmatprep.mubr.f32.mxu0 %v913_v52  ;;  %v924_v58 = vld [vmem:[#allocation3 + $0x550] sm:$0xff] }
 0x20e   :  { %v1524_v5 = vpop.f32.mrb[52].mxu1 }
 0x20f   :  { %v3641_v8 = vadd.f32 %v1524_v5, %v3538_v24  ;;  %2013 = vmatmul.mubr.f32.gmra.mrb[142].mxu0 %v912_v0  ;;  %v1526_v15 = vpop.f32.mrb[53].mxu1  ;;  %v929_v0 = vld [vmem:[#allocation3 + $0x578] sm:$0xff] }
 0x210   :  { %2017 = vmatprep.mubr.f32.mxu0 %v917_v2  ;;  %v928_v15 = vld [vmem:[#allocation3 + $0x570] sm:$0xff] }
 0x212   :  { %v1529_v22 = vpop.f32.mrb[54].mxu1 }
 0x213   :  { %v3644_v27 = vadd.f32 %v3536_v21, %v1529_v22  ;;  %2018 = vmatmul.mubr.f32.gmra.mrb[144].mxu0 %v916_v16  ;;  %v1531_v12 = vpop.f32.mrb[55].mxu1  ;;  %v933_v16 = vld [vmem:[#allocation3 + $0x598] sm:$0xff] }
 0x214   :  { %2022 = vmatprep.mubr.f32.mxu0 %v921_v17  ;;  %v932_v12 = vld [vmem:[#allocation3 + $0x590] sm:$0xff] }
 0x216   :  { %v1534_v52 = vpop.f32.mrb[56].mxu1 }
 0x217   :  { %v3647_v53 = vadd.f32 %v1534_v52, %v3543_v29  ;;  %2023 = vmatmul.mubr.f32.gmra.mrb[146].mxu0 %v920_v41  ;;  %v1536_v24 = vpop.f32.mrb[57].mxu1  ;;  %v937_v41 = vld [vmem:[#allocation3 + $0x5b8] sm:$0xff] }
 0x218   :  { %2027 = vmatprep.mubr.f32.mxu0 %v925_v45  ;;  %v936_v24 = vld [vmem:[#allocation3 + $0x5b0] sm:$0xff] }
 0x21a   :  { %v1539_v2 = vpop.f32.mrb[58].mxu1 }
 0x21b   :  { %v3650_v5 = vadd.f32 %v3541_v26, %v1539_v2  ;;  %2028 = vmatmul.mubr.f32.gmra.mrb[148].mxu0 %v924_v58  ;;  %v1541_v21 = vpop.f32.mrb[59].mxu1  ;;  %v941_v58 = vld [vmem:[#allocation3 + $0x5d8] sm:$0xff] }
 0x21c   :  { %2032 = vmatprep.mubr.f32.mxu0 %v929_v0  ;;  %v940_v21 = vld [vmem:[#allocation3 + $0x5d0] sm:$0xff] }
 0x21e   :  { %v1544_v17 = vpop.f32.mrb[60].mxu1 }
 0x21f   :  { %v3653_v22 = vadd.f32 %v1544_v17, %v3547_v35  ;;  %2033 = vmatmul.mubr.f32.gmra.mrb[150].mxu0 %v928_v15  ;;  %v1546_v29 = vpop.f32.mrb[61].mxu1  ;;  %v945_v15 = vld [vmem:[#allocation3 + $0x5f8] sm:$0xff] }
 0x220   :  { %2037 = vmatprep.mubr.f32.mxu0 %v933_v16  ;;  %v944_v29 = vld [vmem:[#allocation3 + $0x5f0] sm:$0xff] }
 0x222   :  { %v1549_v45 = vpop.f32.mrb[62].mxu1 }
 0x223   :  { %v3656_v52 = vadd.f32 %v3545_v32, %v1549_v45  ;;  %2038 = vmatmul.mubr.f32.gmra.mrb[152].mxu0 %v932_v12  ;;  %v1551_v26 = vpop.f32.mrb[63].mxu1 }
 0x224   :  { %2042 = vmatprep.mubr.f32.mxu0 %v937_v41 }
 0x226   :  { %v1554_v0 = vpop.f32.mrb[64].mxu1 }
 0x227   :  { %v3659_v2 = vadd.f32 %v1554_v0, %v3552_v40  ;;  %2043 = vmatmul.mubr.f32.gmra.mrb[154].mxu0 %v936_v24  ;;  %v1556_v35 = vpop.f32.mrb[65].mxu1 }
 0x228   :  { %2047 = vmatprep.mubr.f32.mxu0 %v941_v58 }
 0x22a   :  { %v1559_v16 = vpop.f32.mrb[66].mxu1 }
 0x22b   :  { %v3662_v17 = vadd.f32 %v3550_v37, %v1559_v16  ;;  %2048 = vmatmul.mubr.f32.gmra.mrb[156].mxu0 %v940_v21  ;;  %v1561_v32 = vpop.f32.mrb[67].mxu1 }
 0x22c   :  { %2052 = vmatprep.mubr.f32.mxu0 %v945_v15 }
 0x22e   :  { %v1564_v12 = vpop.f32.mrb[68].mxu1 }
 0x22f   :  { %v3665_v41 = vadd.f32 %v1564_v12, %v3556_v46  ;;  %2053 = vmatmul.mubr.f32.gmra.mrb[158].mxu0 %v944_v29  ;;  %v1566_v40 = vpop.f32.mrb[69].mxu1 }
 0x232   :  { %v1569_v45 = vpop.f32.mrb[70].mxu1 }
 0x233   :  { %v3668_v26 = vadd.f32 %v3554_v43, %v1569_v45  ;;  %v1571_v24 = vpop.f32.mrb[71].mxu1 }
 0x236   :  { %v1574_v58 = vpop.f32.mrb[72].mxu1 }
 0x237   :  { %v3671_v0 = vadd.f32 %v1574_v58, %v3561_v51  ;;  %v1576_v37 = vpop.f32.mrb[73].mxu1 }
 0x238   :  { %v2110_v37 = vlaneseq }
 0x23a   :  { %v1579_v35 = vpop.f32.mrb[74].mxu1 }
 0x23b   :  { %v3674_v21 = vadd.f32 %v3559_v48, %v1579_v35  ;;  %v1581_v15 = vpop.f32.mrb[75].mxu1 }
 0x23e   :  { %v1584_v16 = vpop.f32.mrb[76].mxu1 }
 0x23f   :  { %v3677_v46 = vadd.f32 %v1584_v16, %v3565_v57  ;;  %v1586_v32 = vpop.f32.mrb[77].mxu1  ;;  %v3686_v57 = vshrl.u32 %v2110_v37, 7 }
 0x242   :  { %v1589_v29 = vpop.f32.mrb[78].mxu1 }
 0x243   :  { %v3680_v43 = vadd.f32 %v3563_v54, %v1589_v29  ;;  %v1591_v12 = vpop.f32.mrb[79].mxu1 }
 0x244   :  { %v2116_v12 = vsub.s32 1, %v3686_v57 }
 0x246   :  { %v1594_v40 = vpop.f32.mrb[80].mxu1  ;;  %v1819_v45 = vpop.f32.mrb[64].mxu0 }
 0x247   :  { %v3683_v51 = vadd.f32 %v1594_v40, %v3570_v62  ;;  %v1820_v24 = vadd.f32 %v1819_v45, %v3635_v39  ;;  %v1821_v48 = vpop.f32.mrb[65].mxu0  ;;  %v1596_v58 = vpop.f32.mrb[81].mxu1  ;;  %v3696_v39 = vld [vmem:[%s3897_s5] sm:$0x7]  ;;  %v2112_v45 = vsub.s32 0, %v3686_v57 }
 0x249   :  { %v2058_v62 = vmax.f32 %v1820_v24, 0.0 }
 0x24a   :  { %v1599_v35 = vpop.f32.mrb[82].mxu1  ;;  %v1824_v15 = vpop.f32.mrb[66].mxu0 }
 0x24b   :  { %v3689_v16 = vadd.f32 %v3568_v59, %v1599_v35  ;;  %v1825_v54 = vadd.f32 %v1824_v15, %v3638_v56  ;;  %v1826_v32 = vpop.f32.mrb[67].mxu0  ;;  %v1601_v29 = vpop.f32.mrb[83].mxu1  ;;  %v2117_v59 = vrot.slane %v3696_v39, %v2116_v12 }
 0x24d   :  { %v2059_v40 = vmax.f32 %v1825_v54, 0.0  ;;  %v3707_v54 = vrot.slane %v3696_v39, %v2112_v45  ;;  %2189 = vmatprep.mubr.f32.mxu1 %v2117_v59 }
 0x24e   :  { %v1604_v48 = vpop.f32.mrb[84].mxu1  ;;  %v1829_v58 = vpop.f32.mrb[68].mxu0 }
 0x24f   :  { %v3700_v37 = vpack.c.bf16 %v2059_v40, %v2058_v62  ;;  %v3703_v56 = vadd.f32 %v1604_v48, %v3574_v4  ;;  %v1830_v35 = vadd.f32 %v1829_v58, %v3641_v8  ;;  %v1831_v24 = vpop.f32.mrb[69].mxu0  ;;  %v1606_v15 = vpop.f32.mrb[85].mxu1 }
 0x251   :  { %v2060_v33 = vmax.f32 %v1830_v35, 0.0 }
 0x252   :  { %v1609_v32 = vpop.f32.mrb[86].mxu1  ;;  %v1834_v29 = vpop.f32.mrb[70].mxu0 }
 0x253   :  { %v3710_v6 = vadd.f32 %v3572_v1, %v1609_v32  ;;  %v1835_v12 = vadd.f32 %v1834_v29, %v3644_v27  ;;  %v1836_v62 = vpop.f32.mrb[71].mxu0  ;;  %v1611_v40 = vpop.f32.mrb[87].mxu1 }
 0x255   :  { %v2061_v4 = vmax.f32 %v1835_v12, 0.0 }
 0x256   :  { %v1614_v48 = vpop.f32.mrb[88].mxu1  ;;  %v1839_v44 = vpop.f32.mrb[72].mxu0 }
 0x257   :  { %v3713_v8 = vpack.c.bf16 %v2061_v4, %v2060_v33  ;;  %v3716_v58 = vadd.f32 %v1614_v48, %v3579_v10  ;;  %v1840_v45 = vadd.f32 %v1839_v44, %v3647_v53  ;;  %v1841_v59 = vpop.f32.mrb[73].mxu0  ;;  %v1616_v24 = vpop.f32.mrb[89].mxu1 }
 0x259   :  { %v2062_v12 = vmax.f32 %v1840_v45, 0.0 }
 0x25a   :  { %v1619_v15 = vpop.f32.mrb[90].mxu1  ;;  %v1844_v1 = vpop.f32.mrb[74].mxu0 }
 0x25b   :  { %v3720_v32 = vadd.f32 %v3577_v7, %v1619_v15  ;;  %v1845_v27 = vadd.f32 %v1844_v1, %v3650_v5  ;;  %v1846_v35 = vpop.f32.mrb[75].mxu0  ;;  %v1621_v29 = vpop.f32.mrb[91].mxu1 }
 0x25d   :  { %v2063_v62 = vmax.f32 %v1845_v27, 0.0 }
 0x25e   :  { %v1624_v33 = vpop.f32.mrb[92].mxu1  ;;  %v1849_v40 = vpop.f32.mrb[76].mxu0 }
 0x25f   :  { %v3723_v4 = vpack.c.bf16 %v2063_v62, %v2062_v12  ;;  %v3726_v10 = vadd.f32 %v1624_v33, %v3583_v18  ;;  %v1850_v44 = vadd.f32 %v1849_v40, %v3653_v22  ;;  %v1851_v53 = vpop.f32.mrb[77].mxu0  ;;  %v1626_v48 = vpop.f32.mrb[93].mxu1 }
 0x261   :  { %v2064_v1 = vmax.f32 %v1850_v44, 0.0 }
 0x262   :  { %v1629_v59 = vpop.f32.mrb[94].mxu1  ;;  %v1854_v7 = vpop.f32.mrb[78].mxu0 }
 0x263   :  { %v3730_v24 = vadd.f32 %v3581_v14, %v1629_v59  ;;  %v1855_v5 = vadd.f32 %v1854_v7, %v3656_v52  ;;  %v1856_v45 = vpop.f32.mrb[79].mxu0  ;;  %v1631_v15 = vpop.f32.mrb[95].mxu1 }
 0x265   :  { %v2065_v27 = vmax.f32 %v1855_v5, 0.0 }
 0x266   :  { %v1634_v35 = vpop.f32.mrb[96].mxu1  ;;  %v1859_v29 = vpop.f32.mrb[80].mxu0 }
 0x267   :  { %v3733_v12 = vpack.c.bf16 %v2065_v27, %v2064_v1  ;;  %v3736_v18 = vadd.f32 %v1634_v35, %v3588_v23  ;;  %v1860_v22 = vadd.f32 %v1859_v29, %v3659_v2  ;;  %v1861_v62 = vpop.f32.mrb[81].mxu0  ;;  %v1636_v33 = vpop.f32.mrb[97].mxu1 }
 0x269   :  { %v2066_v59 = vmax.f32 %v1860_v22, 0.0 }
 0x26a   :  { %v1639_v40 = vpop.f32.mrb[98].mxu1  ;;  %v1864_v14 = vpop.f32.mrb[82].mxu0 }
 0x26b   :  { %v3740_v53 = vadd.f32 %v3586_v20, %v1639_v40  ;;  %v1865_v52 = vadd.f32 %v1864_v14, %v3662_v17  ;;  %v1866_v44 = vpop.f32.mrb[83].mxu0  ;;  %v1641_v48 = vpop.f32.mrb[99].mxu1 }
 0x26d   :  { %v2067_v7 = vmax.f32 %v1865_v52, 0.0 }
 0x26e   :  { %v1644_v5 = vpop.f32.mrb[100].mxu1  ;;  %v1869_v45 = vpop.f32.mrb[84].mxu0 }
 0x26f   :  { %v3743_v15 = vpack.c.bf16 %v2067_v7, %v2066_v59  ;;  %v3746_v23 = vadd.f32 %v1644_v5, %v3592_v30  ;;  %v1870_v2 = vadd.f32 %v1869_v45, %v3665_v41  ;;  %v1871_v1 = vpop.f32.mrb[85].mxu0  ;;  %v1646_v27 = vpop.f32.mrb[101].mxu1 }
 0x271   :  { %v2068_v33 = vmax.f32 %v1870_v2, 0.0 }
 0x272   :  { %v1649_v35 = vpop.f32.mrb[102].mxu1  ;;  %v1874_v20 = vpop.f32.mrb[86].mxu0 }
 0x273   :  { %v3750_v29 = vadd.f32 %v3590_v25, %v1649_v35  ;;  %v1875_v17 = vadd.f32 %v1874_v20, %v3668_v26  ;;  %v1876_v22 = vpop.f32.mrb[87].mxu0  ;;  %v1651_v62 = vpop.f32.mrb[103].mxu1 }
 0x275   :  { %v2069_v40 = vmax.f32 %v1875_v17, 0.0 }
 0x276   :  { %v1654_v14 = vpop.f32.mrb[104].mxu1  ;;  %v1879_v52 = vpop.f32.mrb[88].mxu0 }
 0x277   :  { %v3753_v44 = vpack.c.bf16 %v2069_v40, %v2068_v33  ;;  %v3756_v30 = vadd.f32 %v1654_v14, %v3596_v36  ;;  %v1880_v41 = vadd.f32 %v1879_v52, %v3671_v0  ;;  %v1881_v48 = vpop.f32.mrb[89].mxu0  ;;  %v1656_v59 = vpop.f32.mrb[105].mxu1 }
 0x279   :  { %v2070_v1 = vmax.f32 %v1880_v41, 0.0 }
 0x27a   :  { %v1659_v7 = vpop.f32.mrb[106].mxu1  ;;  %v1884_v25 = vpop.f32.mrb[90].mxu0 }
 0x27b   :  { %v3760_v5 = vadd.f32 %v3594_v34, %v1659_v7  ;;  %v1885_v26 = vadd.f32 %v1884_v25, %v3674_v21  ;;  %v1886_v45 = vpop.f32.mrb[91].mxu0  ;;  %v1661_v2 = vpop.f32.mrb[107].mxu1 }
 0x27d   :  { %v2071_v27 = vmax.f32 %v1885_v26, 0.0 }
 0x27e   :  { %v1664_v35 = vpop.f32.mrb[108].mxu1  ;;  %v1889_v20 = vpop.f32.mrb[92].mxu0 }
 0x27f   :  { %v3763_v17 = vpack.c.bf16 %v2071_v27, %v2070_v1  ;;  %v3766_v36 = vadd.f32 %v1664_v35, %v3600_v42  ;;  %v1890_v0 = vadd.f32 %v1889_v20, %v3677_v46  ;;  %v1891_v22 = vpop.f32.mrb[93].mxu0  ;;  %v1666_v62 = vpop.f32.mrb[109].mxu1 }
 0x281   :  { %v2072_v41 = vmax.f32 %v1890_v0, 0.0 }
 0x282   :  { %v1669_v33 = vpop.f32.mrb[110].mxu1  ;;  %v1894_v34 = vpop.f32.mrb[94].mxu0 }
 0x283   :  { %v3770_v40 = vadd.f32 %v3598_v38, %v1669_v33  ;;  %v1895_v21 = vadd.f32 %v1894_v34, %v3680_v43  ;;  %v1896_v14 = vpop.f32.mrb[95].mxu0  ;;  %v1671_v52 = vpop.f32.mrb[111].mxu1  ;;  %v2120_v38 = vsub.s32 2, %v3686_v57 }
 0x285   :  { %v2073_v48 = vmax.f32 %v1895_v21, 0.0  ;;  %v3781_v43 = vrot.slane %v3696_v39, %v2120_v38 }
 0x286   :  { %v1674_v59 = vpop.f32.mrb[112].mxu1  ;;  %v1899_v7 = vpop.f32.mrb[96].mxu0 }
 0x287   :  { %v3773_v25 = vpack.c.bf16 %v2073_v48, %v2072_v41  ;;  %v3776_v42 = vadd.f32 %v1674_v59, %v3604_v49  ;;  %v1900_v46 = vadd.f32 %v1899_v7, %v3683_v51  ;;  %v1901_v26 = vpop.f32.mrb[97].mxu0  ;;  %v1676_v45 = vpop.f32.mrb[113].mxu1 }
 0x289   :  { %v2074_v49 = vmax.f32 %v1900_v46, 0.0 }
 0x28a   :  { %v1679_v2 = vpop.f32.mrb[114].mxu1  ;;  %v1904_v1 = vpop.f32.mrb[98].mxu0 }
 0x28b   :  { %v3784_v27 = vadd.f32 %v3602_v47, %v1679_v2  ;;  %v1905_v35 = vadd.f32 %v1904_v1, %v3689_v16  ;;  %v1906_v20 = vpop.f32.mrb[99].mxu0  ;;  %v1681_v0 = vpop.f32.mrb[115].mxu1 }
 0x28d   :  { %v2075_v22 = vmax.f32 %v1905_v35, 0.0 }
 0x28e   :  { %v1684_v62 = vpop.f32.mrb[116].mxu1  ;;  %v1909_v51 = vpop.f32.mrb[100].mxu0 }
 0x28f   :  { %v2874_v33 = vpack.c.bf16 %v2075_v22, %v2074_v49  ;;  %v3788_v34 = vadd.f32 %v1684_v62, %v3608_v55  ;;  %v1910_v57 = vadd.f32 %v1909_v51, %v3703_v56  ;;  %v1686_v21 = vpop.f32.mrb[117].mxu1  ;;  %v1911_v39 = vpop.f32.mrb[101].mxu0 }
 0x291   :  { %2875 = vmatprep.subr.bf16.mxu1 %v2874_v33  ;;  %v2076_v59 = vmax.f32 %v1910_v57, 0.0 }
 0x292   :  { %v1689_v14 = vpop.f32.mrb[118].mxu1  ;;  %v1914_v47 = vpop.f32.mrb[102].mxu0  ;;  %2877 = vmatpush3.bf16.msra.mxu1 %v3700_v37 }
 0x293   :  { %v3793_v16 = vadd.f32 %v3606_v50, %v1689_v14  ;;  %v1915_v52 = vadd.f32 %v1914_v47, %v3710_v6  ;;  %v1691_v41 = vpop.f32.mrb[119].mxu1  ;;  %v1916_v48 = vpop.f32.mrb[103].mxu0 }
 0x295   :  { %v2077_v7 = vmax.f32 %v1915_v52, 0.0 }
 0x296   :  { %v1694_v55 = vpop.f32.mrb[120].mxu1  ;;  %v1919_v46 = vpop.f32.mrb[104].mxu0 }
 0x297   :  { %v2878_v26 = vpack.c.bf16 %v2077_v7, %v2076_v59  ;;  %v3797_v56 = vadd.f32 %v1694_v55, %v3612_v61  ;;  %v1920_v45 = vadd.f32 %v1919_v46, %v3716_v58  ;;  %v1696_v38 = vpop.f32.mrb[121].mxu1  ;;  %v1921_v2 = vpop.f32.mrb[105].mxu0 }
 0x299   :  { %2879 = vmatprep.subr.bf16.mxu1 %v2878_v26  ;;  %v2078_v0 = vmax.f32 %v1920_v45, 0.0 }
 0x29a   :  { %v1699_v37 = vpop.f32.mrb[122].mxu1  ;;  %v1924_v50 = vpop.f32.mrb[106].mxu0  ;;  %2881 = vmatpush3.bf16.msra.mxu1 %v3713_v8 }
 0x29b   :  { %v3802_v6 = vadd.f32 %v3610_v60, %v1699_v37  ;;  %v1925_v1 = vadd.f32 %v1924_v50, %v3720_v32  ;;  %v1701_v35 = vpop.f32.mrb[123].mxu1  ;;  %v1926_v20 = vpop.f32.mrb[107].mxu0 }
 0x29d   :  { %v2079_v49 = vmax.f32 %v1925_v1, 0.0 }
 0x29e   :  { %v1704_v61 = vpop.f32.mrb[124].mxu1  ;;  %v1929_v22 = vpop.f32.mrb[108].mxu0 }
 0x29f   :  { %v2882_v62 = vpack.c.bf16 %v2079_v49, %v2078_v0  ;;  %v3806_v58 = vadd.f32 %v1704_v61, %v3616_v3  ;;  %v1930_v51 = vadd.f32 %v1929_v22, %v3726_v10  ;;  %v1706_v33 = vpop.f32.mrb[125].mxu1  ;;  %v1931_v57 = vpop.f32.mrb[109].mxu0 }
 0x2a1   :  { %2883 = vmatprep.subr.bf16.mxu1 %v2882_v62  ;;  %v2080_v47 = vmax.f32 %v1930_v51, 0.0 }
 0x2a2   :  { %v1709_v8 = vpop.f32.mrb[126].mxu1  ;;  %v1934_v60 = vpop.f32.mrb[110].mxu0  ;;  %2885 = vmatpush3.bf16.msra.mxu1 %v3723_v4 }
 0x2a3   :  { %v3811_v32 = vadd.f32 %v3614_v63, %v1709_v8  ;;  %v1935_v21 = vadd.f32 %v1934_v60, %v3730_v24  ;;  %v1711_v39 = vpop.f32.mrb[127].mxu1  ;;  %v1936_v14 = vpop.f32.mrb[111].mxu0 }
 0x2a5   :  { %v2081_v52 = vmax.f32 %v1935_v21, 0.0 }
 0x2a6   :  { %v1714_v3 = vpop.f32.mrb[128].mxu1  ;;  %v1939_v41 = vpop.f32.mrb[112].mxu0 }
 0x2a7   :  { %v2886_v48 = vpack.c.bf16 %v2081_v52, %v2080_v47  ;;  %v3815_v10 = vadd.f32 %v1714_v3, %v3620_v11  ;;  %v1940_v59 = vadd.f32 %v1939_v41, %v3736_v18  ;;  %v1716_v7 = vpop.f32.mrb[129].mxu1  ;;  %v1941_v55 = vpop.f32.mrb[113].mxu0 }
 0x2a9   :  { %2887 = vmatprep.subr.bf16.mxu1 %v2886_v48  ;;  %v2082_v38 = vmax.f32 %v1940_v59, 0.0 }
 0x2aa   :  { %v1719_v4 = vpop.f32.mrb[130].mxu1  ;;  %v1944_v63 = vpop.f32.mrb[114].mxu0  ;;  %2889 = vmatpush3.bf16.msra.mxu1 %v3733_v12 }
 0x2ab   :  { %v3820_v24 = vadd.f32 %v3618_v9, %v1719_v4  ;;  %v1945_v46 = vadd.f32 %v1944_v63, %v3740_v53  ;;  %v1721_v26 = vpop.f32.mrb[131].mxu1  ;;  %v1946_v45 = vpop.f32.mrb[115].mxu0 }
 0x2ad   :  { %v2083_v2 = vmax.f32 %v1945_v46, 0.0 }
 0x2ae   :  { %v1724_v11 = vpop.f32.mrb[132].mxu1  ;;  %v1949_v37 = vpop.f32.mrb[116].mxu0 }
 0x2af   :  { %v2890_v50 = vpack.c.bf16 %v2083_v2, %v2082_v38  ;;  %v3824_v18 = vadd.f32 %v1724_v11, %v3624_v19  ;;  %v1950_v1 = vadd.f32 %v1949_v37, %v3746_v23  ;;  %v1726_v35 = vpop.f32.mrb[133].mxu1  ;;  %v1951_v20 = vpop.f32.mrb[117].mxu0 }
 0x2b0   :  { %v3906_v35 = vmov 0.0|0.0  }
 0x2b1   :  { %2891 = vmatprep.subr.bf16.mxu1 %v2890_v50  ;;  %v2084_v22 = vmax.f32 %v1950_v1, 0.0 }
 0x2b2   :  { %v1729_v12 = vpop.f32.mrb[134].mxu1  ;;  %v1954_v9 = vpop.f32.mrb[118].mxu0  ;;  %2893 = vmatpush3.bf16.msra.mxu1 %v3743_v15 }
 0x2b3   :  { %v3829_v53 = vadd.f32 %v3622_v13, %v1729_v12  ;;  %v1955_v0 = vadd.f32 %v1954_v9, %v3750_v29  ;;  %v1731_v49 = vpop.f32.mrb[135].mxu1  ;;  %v1956_v61 = vpop.f32.mrb[119].mxu0  ;;  %v2992_v9 = vmov 0.0  }
 0x2b5   :  { %v2085_v62 = vmax.f32 %v1955_v0, 0.0 }
 0x2b6   :  { %v1734_v19 = vpop.f32.mrb[136].mxu1  ;;  %v1959_v51 = vpop.f32.mrb[120].mxu0 }
 0x2b7   :  { %v2894_v33 = vpack.c.bf16 %v2085_v62, %v2084_v22  ;;  %v3833_v23 = vadd.f32 %v1734_v19, %v3628_v31  ;;  %v1960_v57 = vadd.f32 %v1959_v51, %v3756_v30  ;;  %v1736_v8 = vpop.f32.mrb[137].mxu1  ;;  %v1961_v60 = vpop.f32.mrb[121].mxu0  ;;  %v3904_v30 = vld [vmem:[#allocation10_spill] sm:$0xff] }
 0x2b9   :  { %2895 = vmatprep.subr.bf16.mxu1 %v2894_v33  ;;  %v2086_v47 = vmax.f32 %v1960_v57, 0.0 }
 0x2ba   :  { %v1739_v15 = vpop.f32.mrb[138].mxu1  ;;  %v1964_v13 = vpop.f32.mrb[122].mxu0  ;;  %2897 = vmatpush3.bf16.msra.mxu1 %v3753_v44 }
 0x2bb   :  { %v3838_v29 = vadd.f32 %v3626_v28, %v1739_v15  ;;  %v1965_v21 = vadd.f32 %v1964_v13, %v3760_v5  ;;  %v1741_v39 = vpop.f32.mrb[139].mxu1  ;;  %v1966_v14 = vpop.f32.mrb[123].mxu0  ;;  %v3905_v5 = vld [vmem:[#allocation9_spill] sm:$0xff] }
 0x2bd   :  { %v2087_v52 = vmax.f32 %v1965_v21, 0.0 }
 0x2be   :  { %v1744_v31 = vpop.f32.mrb[140].mxu1  ;;  %v1969_v3 = vpop.f32.mrb[124].mxu0 }
 0x2bf   :  { %v2898_v41 = vpack.c.bf16 %v2087_v52, %v2086_v47  ;;  %v3842_v48 = vadd.f32 %v1744_v31, %v3904_v30  ;;  %v1970_v59 = vadd.f32 %v1969_v3, %v3766_v36  ;;  %v1746_v7 = vpop.f32.mrb[141].mxu1  ;;  %v1971_v55 = vpop.f32.mrb[125].mxu0 }
 0x2c1   :  { %2899 = vmatprep.subr.bf16.mxu1 %v2898_v41  ;;  %v2088_v45 = vmax.f32 %v1970_v59, 0.0 }
 0x2c2   :  { %v1749_v44 = vpop.f32.mrb[142].mxu1  ;;  %v1974_v28 = vpop.f32.mrb[126].mxu0  ;;  %2901 = vmatpush3.bf16.msra.mxu1 %v3763_v17 }
 0x2c3   :  { %v3847_v4 = vadd.f32 %v3905_v5, %v1749_v44  ;;  %v1975_v63 = vadd.f32 %v1974_v28, %v3770_v40  ;;  %v1976_v46 = vpop.f32.mrb[127].mxu0  ;;  %v1751_v26 = vpop.f32.mrb[143].mxu1 }
 0x2c5   :  { %v2089_v38 = vmax.f32 %v1975_v63, 0.0 }
 0x2c6   :  { %v1979_v2 = vpop.f32.mrb[128].mxu0 }
 0x2c7   :  { %v2902_v11 = vpack.c.bf16 %v2089_v38, %v2088_v45  ;;  %v1980_v36 = vadd.f32 %v1979_v2, %v3776_v42  ;;  %v1981_v37 = vpop.f32.mrb[129].mxu0 }
 0x2c9   :  { %2903 = vmatprep.subr.bf16.mxu1 %v2902_v11  ;;  %v2090_v20 = vmax.f32 %v1980_v36, 0.0 }
 0x2ca   :  { %v1984_v50 = vpop.f32.mrb[130].mxu0  ;;  %2905 = vmatpush3.bf16.msra.mxu1 %v3773_v25 }
 0x2cb   :  { %v1985_v17 = vadd.f32 %v1984_v50, %v3784_v27  ;;  %v1986_v1 = vpop.f32.mrb[131].mxu0  ;;  %2906 = vmatprep.subr.bf16.mxu1 %v3906_v35 }
 0x2cd   :  { %v2091_v40 = vmax.f32 %v1985_v17, 0.0  ;;  %2190 = vmatmul.mubr.f32.vlgmr.msra.gmra.mrb[144].mxu1 %v3707_v54 }
 0x2ce   :  { %v1989_v12 = vpop.f32.mrb[132].mxu0  ;;  %2769 = vmatprep.mubr.msk.f32.mxu1 %vm2991_vm5, %v2992_v9 }
 0x2cf   :  { %v2907_v0 = vpack.c.bf16 %v2091_v40, %v2090_v20  ;;  %v1990_v42 = vadd.f32 %v1989_v12, %v3788_v34  ;;  %v1991_v49 = vpop.f32.mrb[133].mxu0 }
 0x2d1   :  { %2908 = vmatpush3.bf16.msra.mxu1 %v2907_v0  ;;  %v2092_v22 = vmax.f32 %v1990_v42, 0.0 }
 0x2d2   :  { %v1994_v61 = vpop.f32.mrb[134].mxu0  ;;  %2909 = vmatprep.subr.bf16.mxu1 %v3906_v35 }
 0x2d3   :  { %v1995_v25 = vadd.f32 %v1994_v61, %v3793_v16  ;;  %v1996_v27 = vpop.f32.mrb[135].mxu0 }
 0x2d5   :  { %v2093_v62 = vmax.f32 %v1995_v25, 0.0 }
 0x2d6   :  { %v1999_v19 = vpop.f32.mrb[136].mxu0 }
 0x2d7   :  { %v2910_v51 = vpack.c.bf16 %v2093_v62, %v2092_v22  ;;  %v2000_v54 = vadd.f32 %v1999_v19, %v3797_v56  ;;  %v2001_v33 = vpop.f32.mrb[137].mxu0 }
 0x2d9   :  { %2911 = vmatpush3.bf16.msra.mxu1 %v2910_v51  ;;  %v2094_v60 = vmax.f32 %v2000_v54, 0.0 }
 0x2da   :  { %v2004_v57 = vpop.f32.mrb[138].mxu0  ;;  %2912 = vmatprep.subr.bf16.mxu1 %v3906_v35 }
 0x2db   :  { %v2005_v34 = vadd.f32 %v2004_v57, %v3802_v6  ;;  %v2006_v8 = vpop.f32.mrb[139].mxu0 }
 0x2dd   :  { %v2095_v15 = vmax.f32 %v2005_v34, 0.0 }
 0x2de   :  { %v2009_v13 = vpop.f32.mrb[140].mxu0 }
 0x2df   :  { %v2913_v21 = vpack.c.bf16 %v2095_v15, %v2094_v60  ;;  %v2010_v16 = vadd.f32 %v2009_v13, %v3806_v58  ;;  %v2011_v39 = vpop.f32.mrb[141].mxu0 }
 0x2e1   :  { %2914 = vmatpush3.bf16.msra.mxu1 %v2913_v21  ;;  %v2096_v52 = vmax.f32 %v2010_v16, 0.0 }
 0x2e2   :  { %v2014_v14 = vpop.f32.mrb[142].mxu0  ;;  %2915 = vmatprep.subr.bf16.mxu1 %v3906_v35 }
 0x2e3   :  { %v2015_v56 = vadd.f32 %v2014_v14, %v3811_v32  ;;  %v2016_v47 = vpop.f32.mrb[143].mxu0 }
 0x2e5   :  { %v2097_v31 = vmax.f32 %v2015_v56, 0.0 }
 0x2e6   :  { %v2019_v3 = vpop.f32.mrb[144].mxu0 }
 0x2e7   :  { %v2916_v41 = vpack.c.bf16 %v2097_v31, %v2096_v52  ;;  %v2020_v6 = vadd.f32 %v2019_v3, %v3815_v10  ;;  %v2021_v30 = vpop.f32.mrb[145].mxu0 }
 0x2e9   :  { %2917 = vmatpush3.bf16.msra.mxu1 %v2916_v41  ;;  %v2098_v55 = vmax.f32 %v2020_v6, 0.0 }
 0x2ea   :  { %v2024_v59 = vpop.f32.mrb[146].mxu0  ;;  %2918 = vmatprep.subr.bf16.mxu1 %v3906_v35 }
 0x2eb   :  { %v2025_v58 = vadd.f32 %v2024_v59, %v3820_v24  ;;  %v2026_v7 = vpop.f32.mrb[147].mxu0 }
 0x2ed   :  { %v2099_v44 = vmax.f32 %v2025_v58, 0.0 }
 0x2ee   :  { %v2029_v28 = vpop.f32.mrb[148].mxu0 }
 0x2ef   :  { %v2919_v5 = vpack.c.bf16 %v2099_v44, %v2098_v55  ;;  %v2030_v32 = vadd.f32 %v2029_v28, %v3824_v18  ;;  %v2031_v63 = vpop.f32.mrb[149].mxu0 }
 0x2f1   :  { %2920 = vmatpush3.bf16.msra.mxu1 %v2919_v5  ;;  %v2100_v45 = vmax.f32 %v2030_v32, 0.0 }
 0x2f2   :  { %v2034_v46 = vpop.f32.mrb[150].mxu0  ;;  %2921 = vmatprep.subr.bf16.mxu1 %v3906_v35 }
 0x2f3   :  { %v2035_v10 = vadd.f32 %v2034_v46, %v3829_v53  ;;  %v2036_v26 = vpop.f32.mrb[151].mxu0 }
 0x2f5   :  { %v2101_v38 = vmax.f32 %v2035_v10, 0.0 }
 0x2f6   :  { %v2039_v2 = vpop.f32.mrb[152].mxu0 }
 0x2f7   :  { %v2922_v11 = vpack.c.bf16 %v2101_v38, %v2100_v45  ;;  %v2040_v24 = vadd.f32 %v2039_v2, %v3833_v23  ;;  %v2041_v36 = vpop.f32.mrb[153].mxu0 }
 0x2f9   :  { %2923 = vmatpush3.bf16.msra.mxu1 %v2922_v11  ;;  %v2102_v17 = vmax.f32 %v2040_v24, 0.0 }
 0x2fa   :  { %v2044_v37 = vpop.f32.mrb[154].mxu0  ;;  %2924 = vmatprep.subr.bf16.mxu1 %v3906_v35 }
 0x2fb   :  { %v2045_v18 = vadd.f32 %v2044_v37, %v3838_v29  ;;  %v2046_v50 = vpop.f32.mrb[155].mxu0 }
 0x2fd   :  { %v2103_v1 = vmax.f32 %v2045_v18, 0.0 }
 0x2fe   :  { %v2049_v20 = vpop.f32.mrb[156].mxu0 }
 0x2ff   :  { %v2925_v40 = vpack.c.bf16 %v2103_v1, %v2102_v17  ;;  %v2050_v53 = vadd.f32 %v2049_v20, %v3842_v48  ;;  %v2051_v12 = vpop.f32.mrb[157].mxu0  ;;  %v2108_v48 = vstv %s3898_s6 }
 0x301   :  { %2926 = vmatpush3.bf16.msra.mxu1 %v2925_v40  ;;  %v2104_v42 = vmax.f32 %v2050_v53, 0.0 }
 0x302   :  { %v2054_v9 = vpop.f32.mrb[158].mxu0  ;;  %2927 = vmatprep.subr.bf16.mxu1 %v3906_v35 }
 0x303   :  { %v2055_v23 = vadd.f32 %v2054_v9, %v3847_v4  ;;  %v2056_v0 = vpop.f32.mrb[159].mxu0 }
 0x305   :  { %v2105_v49 = vmax.f32 %v2055_v23, 0.0 }
 0x307   :  { %v2928_v61 = vpack.c.bf16 %v2105_v49, %v2104_v42 }
 0x309   :  { %2929 = vmatpush3.bf16.msra.mxu1 %v2928_v61 }
 0x30c   :  { %2770 = vmatmul.mubr.f32.vlgmr.msra.gmra.mrb[146].mxu1 %v3781_v43 }
 0x3a0   :  { %v2543_v29 = vpop.f32.mrb[144].mxu1 }
 0x3a1   :  { %v2544_v25 = vpop.f32.mrb[145].mxu1 }
 0x3a2   :  { %v2545_v27 = vadd.f32 %v2544_v25, %v2543_v29 }
 0x3a4   :  { %v2192_v22 = vadd.f32 %v2545_v27, %v2108_v48 }
 0x3df   :  { %v2261_v35 = vpop.f32.mrb[146].mxu1 }
 0x3e0   :  { %v2262_v4 = vadd.f32 %v2261_v35, %v2192_v22  ;;  %v2771_v62 = vpop.f32.mrb[147].mxu1 }
 0x3e2   :  { %2266 = vst.msk [vmem:[#allocation6] sm:$0x1] %vm2265_vm6, %v2262_v4 }
 0x3e3   :  { %2971 = shalt.err (!%p2968_p12)
}
 0x3e4   :  { %s2972_s6 = scalar_lea.hbm %s3899_s7, 16 }
 0x3e5   :  { %p2973_p13 = scmp.ne.s32.totalorder %s3899_s7, %s2972_s6  ;;  %p2976_p0 = scmp.lt.u32.totalorder %s2972_s6, %s3899_s7 }
 0x3e7   :  { %p2978_p1 = pnand %p2976_p0, %p2973_p13 }
 0x3e9   :  { %2981 = shalt.err (!%p2978_p1)
}
 0x3ea   :  { %2276 = dma.vmem_to_hbm [thread:$0]  %s2274_s14, 16, %s3899_s7, [#allocation5]  }
 0x3eb   :  { %2984 = dma.done.wait [#allocation5], 16  }
 0x3ec   :  { %2985 = vsyncadd [#allocation5], 4294967280 }
 0x3ed   :  { %2280 = vsyncpa [#allocation4], 1 }
 0x3ee   :  { %2281 = vsyncpa [#allocation5], 1 }

</bundles_post_ra>
